<compile_context>
chip_gen: v7x
topology: tpu7x:2x2x1
jax: 0.10.0
libtpu: 0.0.40
codegen_flags: <defaults>
</compile_context>

<pallas_src>
import math

import jax
import jax.numpy as jnp
from jax.experimental import pallas as pl
from jax.experimental.pallas import tpu as pltpu

# ---------------- config (small, consistent with the module) ----------------
BATCH = 2
SEQ = 8
EMBED_DIM = 32
NUM_HEADS = 4
HEAD_DIM = EMBED_DIM // NUM_HEADS
FF_DIM = 64
NUM_LAYERS = 2
LN_EPS = 1e-5

QKVG_DIM = 4 * EMBED_DIM                     # q | k | v | gate1  -> 128 (lane-dense)
FFG_DIM = 128                                # w1 (64) | wg2 (32) | zero pad (32)
assert FF_DIM + EMBED_DIM <= FFG_DIM


# ------------------------------- kernel -------------------------------------
def encoder_kernel(
    x_ref,
    wqkvg_ref, bqkvg_ref,        # (1, D, 128), (1, 1, 128)
    wo_ref, bo_ref,              # (1, D, D),   (1, 1, D)
    n1g_ref, n1b_ref,            # (1, 1, D)
    w1g2_ref, b1g2_ref,          # (1, D, 128), (1, 1, 128)
    w2_ref, b2_ref,              # (1, FF, D),  (1, 1, D)
    n2g_ref, n2b_ref,            # (1, 1, D)
    o_ref,
    h_ref,                       # VMEM scratch: (B*S, D) activation carried across layers
):
    B, S, D = x_ref.shape
    T = B * S
    layer = pl.program_id(0)

    # Load the input slab once (layer 0); afterwards the activation lives in VMEM scratch.
    @pl.when(layer == 0)
    def _():
        h_ref[...] = x_ref[...].reshape(T, D).astype(jnp.float32)

    x2 = h_ref[...]                                            # (T, D) f32

    def layernorm(t, g, b):
        mu = jnp.mean(t, axis=-1, keepdims=True)
        var = jnp.mean((t - mu) ** 2, axis=-1, keepdims=True)
        return (t - mu) * jax.lax.rsqrt(var + LN_EPS) * g + b

    # ---- fused Q | K | V | gate1 projection: one lane-dense (T,32)@(32,128) matmul ----
    qkvg = jnp.dot(x2, wqkvg_ref[0], preferred_element_type=jnp.float32) + bqkvg_ref[0]
    q = qkvg[:, 0 * D:1 * D]
    k = qkvg[:, 1 * D:2 * D]
    v = qkvg[:, 2 * D:3 * D]
    gate1 = jax.nn.sigmoid(qkvg[:, 3 * D:4 * D])

    # ---- multi-head attention as ONE batched contraction pair ----
    # (T, D) -> (H*B, S, head_dim): heads stacked along the leading (batch) axis.
    def split_heads(t):
        t3 = t.reshape(B, S, D)
        return jnp.concatenate(
            [t3[:, :, h * HEAD_DIM:(h + 1) * HEAD_DIM] for h in range(NUM_HEADS)],
            axis=0,
        )                                                      # (H*B, S, hd)

    qh, kh, vh = split_heads(q), split_heads(k), split_heads(v)
    scale = 1.0 / math.sqrt(HEAD_DIM)
    s = jnp.einsum("bqd,bkd->bqk", qh, kh,
                   preferred_element_type=jnp.float32) * scale      # (H*B, S, S)
    s = s - jnp.max(s, axis=-1, keepdims=True)
    p = jnp.exp(s)
    p = p * pl.reciprocal(jnp.sum(p, axis=-1, keepdims=True), approx=True)
    ah = jnp.einsum("bqk,bkd->bqd", p, vh,
                    preferred_element_type=jnp.float32)              # (H*B, S, hd)

    # (H*B, S, hd) -> (B, S, D) -> (T, D)
    attn = jnp.concatenate(
        [ah[h * B:(h + 1) * B] for h in range(NUM_HEADS)], axis=-1
    ).reshape(T, D)
    attn = jnp.dot(attn, wo_ref[0], preferred_element_type=jnp.float32) + bo_ref[0]

    # ---- highway 1: x1 = g1 * norm1(attn) + (1 - g1) * x ----
    x1 = gate1 * layernorm(attn, n1g_ref[0], n1b_ref[0]) + (1.0 - gate1) * x2

    # ---- fused FFN-first + gate2 projection: one lane-dense (T,32)@(32,128) matmul ----
    hg = jnp.dot(x1, w1g2_ref[0], preferred_element_type=jnp.float32) + b1g2_ref[0]
    hidden = jnp.maximum(hg[:, :FF_DIM], 0.0)                        # ReLU
    gate2 = jax.nn.sigmoid(hg[:, FF_DIM:FF_DIM + D])
    ff = jnp.dot(hidden, w2_ref[0], preferred_element_type=jnp.float32) + b2_ref[0]

    # ---- highway 2: out = g2 * norm2(ff) + (1 - g2) * x1 ----
    out = gate2 * layernorm(ff, n2g_ref[0], n2b_ref[0]) + (1.0 - gate2) * x1

    h_ref[...] = out                                                 # carry to next layer
    o_ref[...] = out.reshape(B, S, D).astype(o_ref.dtype)


# ------------------------------ wrapper --------------------------------------
PACKED_ORDER = [
    "wqkvg", "bqkvg", "wo", "bo", "n1g", "n1b",
    "w1g2", "b1g2", "w2", "b2", "n2g", "n2b",
]


def pack_layer_params(layer_params):
    """Fuse + stack per-layer weights with a leading NUM_LAYERS axis."""
    pad = FFG_DIM - (FF_DIM + EMBED_DIM)

    def stack(fn):
        return jnp.stack([fn(p) for p in layer_params], axis=0)

    return {
        "wqkvg": stack(lambda p: jnp.concatenate(
            [p["wq"], p["wk"], p["wv"], p["wg1"]], axis=1)),
        "bqkvg": stack(lambda p: jnp.concatenate(
            [p["bq"], p["bk"], p["bv"], p["bg1"]], axis=1)),
        "wo": stack(lambda p: p["wo"]),
        "bo": stack(lambda p: p["bo"]),
        "n1g": stack(lambda p: p["n1g"]),
        "n1b": stack(lambda p: p["n1b"]),
        "w1g2": stack(lambda p: jnp.concatenate(
            [p["w1"], p["wg2"], jnp.zeros((EMBED_DIM, pad), jnp.float32)], axis=1)),
        "b1g2": stack(lambda p: jnp.concatenate(
            [p["b1"], p["bg2"], jnp.zeros((1, pad), jnp.float32)], axis=1)),
        "w2": stack(lambda p: p["w2"]),
        "b2": stack(lambda p: p["b2"]),
        "n2g": stack(lambda p: p["n2g"]),
        "n2b": stack(lambda p: p["n2b"]),
    }


def transformer_encoder(x, layer_params):
    """x: (B, S, D) float32.  layer_params: list of per-layer (unfused) weight dicts."""
    B, S, D = x.shape
    L = len(layer_params)
    packed = pack_layer_params(layer_params)
    weight_args = [packed[n] for n in PACKED_ORDER]

    in_specs = [pl.BlockSpec((B, S, D), lambda l: (0, 0, 0))]        # fetched once
    in_specs += [
        pl.BlockSpec((1,) + w.shape[1:], lambda l: (l, 0, 0)) for w in weight_args
    ]

    return pl.pallas_call(
        encoder_kernel,
        out_shape=jax.ShapeDtypeStruct((B, S, D), x.dtype),
        grid_spec=pltpu.PrefetchScalarGridSpec(
            num_scalar_prefetch=0,
            grid=(L,),                                               # layer axis only
            in_specs=in_specs,
            out_specs=pl.BlockSpec((B, S, D), lambda l: (0, 0, 0)),
            scratch_shapes=[pltpu.VMEM((B * S, D), jnp.float32)],
        ),
        compiler_params=pltpu.CompilerParams(
            dimension_semantics=("arbitrary",),                      # layers are sequential
            vmem_limit_bytes=32 * 1024 * 1024,
        ),
    )(x, *weight_args)


# --------------------------- parameter init ----------------------------------
def _linear_params(key, fan_in, fan_out):
    """PyTorch nn.Linear default init: U(-1/sqrt(fan_in), 1/sqrt(fan_in)).
    Weight returned pre-transposed as (fan_in, fan_out); bias as (1, fan_out)."""
    kw, kb = jax.random.split(key)
    bound = 1.0 / math.sqrt(fan_in)
    w = jax.random.uniform(kw, (fan_in, fan_out), jnp.float32, -bound, bound)
    b = jax.random.uniform(kb, (1, fan_out), jnp.float32, -bound, bound)
    return w, b


def init_layer_params(key):
    keys = jax.random.split(key, 8)
    p = {}
    p["wq"], p["bq"] = _linear_params(keys[0], EMBED_DIM, EMBED_DIM)
    p["wk"], p["bk"] = _linear_params(keys[1], EMBED_DIM, EMBED_DIM)
    p["wv"], p["bv"] = _linear_params(keys[2], EMBED_DIM, EMBED_DIM)
    p["wo"], p["bo"] = _linear_params(keys[3], EMBED_DIM, EMBED_DIM)
    p["n1g"] = jnp.ones((1, EMBED_DIM), jnp.float32)
    p["n1b"] = jnp.zeros((1, EMBED_DIM), jnp.float32)
    p["n2g"] = jnp.ones((1, EMBED_DIM), jnp.float32)
    p["n2b"] = jnp.zeros((1, EMBED_DIM), jnp.float32)
    p["wg1"], p["bg1"] = _linear_params(keys[4], EMBED_DIM, EMBED_DIM)
    p["wg2"], p["bg2"] = _linear_params(keys[5], EMBED_DIM, EMBED_DIM)
    p["w1"], p["b1"] = _linear_params(keys[6], EMBED_DIM, FF_DIM)
    p["w2"], p["b2"] = _linear_params(keys[7], FF_DIM, EMBED_DIM)
    return p


# ---------------------------- pure-JAX reference ------------------------------
def reference_layer(x, p):
    def lin(t, w, b):
        return t @ w + b

    def ln(t, g, b):
        mu = jnp.mean(t, axis=-1, keepdims=True)
        var = jnp.mean((t - mu) ** 2, axis=-1, keepdims=True)
        return (t - mu) * jax.lax.rsqrt(var + LN_EPS) * g + b

    B, S, D = x.shape
    q = lin(x, p["wq"], p["bq"]).reshape(B, S, NUM_HEADS, HEAD_DIM).transpose(0, 2, 1, 3)
    k = lin(x, p["wk"], p["bk"]).reshape(B, S, NUM_HEADS, HEAD_DIM).transpose(0, 2, 1, 3)
    v = lin(x, p["wv"], p["bv"]).reshape(B, S, NUM_HEADS, HEAD_DIM).transpose(0, 2, 1, 3)
    scores = jnp.einsum("bhqd,bhkd->bhqk", q, k) / math.sqrt(HEAD_DIM)
    attn_w = jax.nn.softmax(scores, axis=-1)
    attn = jnp.einsum("bhqk,bhkd->bhqd", attn_w, v).transpose(0, 2, 1, 3).reshape(B, S, D)
    attn = lin(attn, p["wo"], p["bo"])
    g1 = jax.nn.sigmoid(lin(x, p["wg1"], p["bg1"]))
    x1 = g1 * ln(attn, p["n1g"], p["n1b"]) + (1.0 - g1) * x
    ff = lin(jnp.maximum(lin(x1, p["w1"], p["b1"]), 0.0), p["w2"], p["b2"])
    g2 = jax.nn.sigmoid(lin(x1, p["wg2"], p["bg2"]))
    return g2 * ln(ff, p["n2g"], p["n2b"]) + (1.0 - g2) * x1


def reference_encoder(x, layer_params):
    for p in layer_params:
        x = reference_layer(x, p)
    return x


# --------------------------------- main ---------------------------------------
if __name__ == "__main__":
    root = jax.random.PRNGKey(0)
    k_x, *layer_keys = jax.random.split(root, 1 + NUM_LAYERS)

    x = jax.random.normal(k_x, (BATCH, SEQ, EMBED_DIM), jnp.float32)
    layer_params = [init_layer_params(k) for k in layer_keys]

    out = jax.block_until_ready(transformer_encoder(x, layer_params))
    ref = reference_encoder(x, layer_params)

    assert out.shape == (BATCH, SEQ, EMBED_DIM)
    max_diff = jnp.max(jnp.abs(out - ref))
    # f32 math throughout; tolerance covers the approx (EUP) softmax reciprocal.
    assert jnp.allclose(out, ref, atol=5e-3, rtol=5e-3), f"max abs diff {max_diff}"

    print("KERNEL_OK")
</pallas_src>

<mosaic_0001>
module attributes {stable_mosaic.version = 11 : i64} {
  func.func @encoder_kernel(%arg0: i32, %arg1: memref<2x8x32xf32, #tpu.memory_space<vmem>>, %arg2: memref<1x32x128xf32, #tpu.memory_space<vmem>>, %arg3: memref<1x1x128xf32, #tpu.memory_space<vmem>>, %arg4: memref<1x32x32xf32, #tpu.memory_space<vmem>>, %arg5: memref<1x1x32xf32, #tpu.memory_space<vmem>>, %arg6: memref<1x1x32xf32, #tpu.memory_space<vmem>>, %arg7: memref<1x1x32xf32, #tpu.memory_space<vmem>>, %arg8: memref<1x32x128xf32, #tpu.memory_space<vmem>>, %arg9: memref<1x1x128xf32, #tpu.memory_space<vmem>>, %arg10: memref<1x64x32xf32, #tpu.memory_space<vmem>>, %arg11: memref<1x1x32xf32, #tpu.memory_space<vmem>>, %arg12: memref<1x1x32xf32, #tpu.memory_space<vmem>>, %arg13: memref<1x1x32xf32, #tpu.memory_space<vmem>>, %arg14: memref<2x8x32xf32, #tpu.memory_space<vmem>>, %arg15: memref<16x32xf32, #tpu.memory_space<vmem>>) attributes {dimension_semantics = [#tpu.dimension_semantics<arbitrary>], iteration_bounds = array<i64: 2>, scalar_prefetch = 0 : i64, scratch_operands = 1 : i64, tpu.core_type = #tpu.core_type<tc>, window_params = [{pipeline_mode = #tpu.pipeline_mode<synchronous>, transform_indices = @transform_0, window_bounds = array<i64: 2, 8, 32>}, {transform_indices = @transform_1, window_bounds = array<i64: 1, 32, 128>}, {transform_indices = @transform_2, window_bounds = array<i64: 1, 1, 128>}, {transform_indices = @transform_3, window_bounds = array<i64: 1, 32, 32>}, {transform_indices = @transform_4, window_bounds = array<i64: 1, 1, 32>}, {transform_indices = @transform_5, window_bounds = array<i64: 1, 1, 32>}, {transform_indices = @transform_6, window_bounds = array<i64: 1, 1, 32>}, {transform_indices = @transform_7, window_bounds = array<i64: 1, 32, 128>}, {transform_indices = @transform_8, window_bounds = array<i64: 1, 1, 128>}, {transform_indices = @transform_9, window_bounds = array<i64: 1, 64, 32>}, {transform_indices = @transform_10, window_bounds = array<i64: 1, 1, 32>}, {transform_indices = @transform_11, window_bounds = array<i64: 1, 1, 32>}, {transform_indices = @transform_12, window_bounds = array<i64: 1, 1, 32>}, {pipeline_mode = #tpu.pipeline_mode<synchronous>, transform_indices = @transform_13, window_bounds = array<i64: 2, 8, 32>}]} {
    %c0_i32 = arith.constant 0 : i32
    %0 = arith.cmpi eq, %arg0, %c0_i32 : i32
    %1 = arith.extui %0 : i1 to i32
    %c0_i32_0 = arith.constant 0 : i32
    %2 = arith.cmpi ne, %1, %c0_i32_0 : i32
    scf.if %2 {
      %c0_66 = arith.constant 0 : index
      %c0_67 = arith.constant 0 : index
      %c0_68 = arith.constant 0 : index
      %153 = vector.load %arg1[%c0_66, %c0_67, %c0_68] : memref<2x8x32xf32, #tpu.memory_space<vmem>>, vector<2x8x32xf32>
      %154 = vector.shape_cast %153 : vector<2x8x32xf32> to vector<16x32xf32>
      %c0_69 = arith.constant 0 : index
      %c0_70 = arith.constant 0 : index
      %155 = vector.load %arg15[%c0_69, %c0_70] : memref<16x32xf32, #tpu.memory_space<vmem>>, vector<16x32xf32>
      tpu.vector_store %arg15[%c0_69, %c0_70], %154 {strides = array<i32>} : memref<16x32xf32, #tpu.memory_space<vmem>>, vector<16x32xf32>,
    } else {
    }
    %c0 = arith.constant 0 : index
    %c0_1 = arith.constant 0 : index
    %3 = vector.load %arg15[%c0, %c0_1] : memref<16x32xf32, #tpu.memory_space<vmem>>, vector<16x32xf32>
    %c0_2 = arith.constant 0 : index
    %c0_3 = arith.constant 0 : index
    %c0_4 = arith.constant 0 : index
    %4 = vector.load %arg2[%c0_2, %c0_3, %c0_4] : memref<1x32x128xf32, #tpu.memory_space<vmem>>, vector<1x32x128xf32>
    %5 = vector.shape_cast %4 : vector<1x32x128xf32> to vector<32x128xf32>
    %cst = arith.constant dense<0.000000e+00> : vector<16x128xf32>
    %6 = tpu.matmul %3, %5, %cst {dimension_numbers = #tpu.dot_dimension_numbers<[1], [0], [0], [1], [0, 0, 1, 1], [], []>} : vector<16x32xf32>, vector<32x128xf32>, vector<16x128xf32> -> vector<16x128xf32>
    %c0_5 = arith.constant 0 : index
    %c0_6 = arith.constant 0 : index
    %c0_7 = arith.constant 0 : index
    %7 = vector.load %arg3[%c0_5, %c0_6, %c0_7] : memref<1x1x128xf32, #tpu.memory_space<vmem>>, vector<1x1x128xf32>
    %8 = vector.shape_cast %7 : vector<1x1x128xf32> to vector<1x128xf32>
    %9 = vector.broadcast %8 : vector<1x128xf32> to vector<16x128xf32>
    %10 = arith.addf %6, %9 : vector<16x128xf32>
    %11 = vector.extract_strided_slice %10 {offsets = [0, 0], sizes = [16, 32], strides = [1, 1]} : vector<16x128xf32> to vector<16x32xf32>
    %12 = vector.extract_strided_slice %10 {offsets = [0, 32], sizes = [16, 32], strides = [1, 1]} : vector<16x128xf32> to vector<16x32xf32>
    %13 = vector.extract_strided_slice %10 {offsets = [0, 64], sizes = [16, 32], strides = [1, 1]} : vector<16x128xf32> to vector<16x32xf32>
    %14 = vector.extract_strided_slice %10 {offsets = [0, 96], sizes = [16, 32], strides = [1, 1]} : vector<16x128xf32> to vector<16x32xf32>
    %15 = arith.negf %14 : vector<16x32xf32>
    %16 = math.exp %15 : vector<16x32xf32>
    %cst_8 = arith.constant 1.000000e+00 : f32
    %17 = vector.broadcast %cst_8 : f32 to vector<16x32xf32>
    %18 = arith.addf %17, %16 : vector<16x32xf32>
    %19 = arith.divf %17, %18 : vector<16x32xf32>
    %20 = vector.shape_cast %11 : vector<16x32xf32> to vector<2x8x32xf32>
    %21 = vector.extract_strided_slice %20 {offsets = [0, 0, 0], sizes = [2, 8, 8], strides = [1, 1, 1]} : vector<2x8x32xf32> to vector<2x8x8xf32>
    %22 = vector.extract_strided_slice %20 {offsets = [0, 0, 8], sizes = [2, 8, 8], strides = [1, 1, 1]} : vector<2x8x32xf32> to vector<2x8x8xf32>
    %23 = vector.extract_strided_slice %20 {offsets = [0, 0, 16], sizes = [2, 8, 8], strides = [1, 1, 1]} : vector<2x8x32xf32> to vector<2x8x8xf32>
    %24 = vector.extract_strided_slice %20 {offsets = [0, 0, 24], sizes = [2, 8, 8], strides = [1, 1, 1]} : vector<2x8x32xf32> to vector<2x8x8xf32>
    %25 = tpu.concatenate %21, %22, %23, %24 in 0 : vector<2x8x8xf32>, vector<2x8x8xf32>, vector<2x8x8xf32>, vector<2x8x8xf32> -> vector<8x8x8xf32>
    %26 = vector.shape_cast %12 : vector<16x32xf32> to vector<2x8x32xf32>
    %27 = vector.extract_strided_slice %26 {offsets = [0, 0, 0], sizes = [2, 8, 8], strides = [1, 1, 1]} : vector<2x8x32xf32> to vector<2x8x8xf32>
    %28 = vector.extract_strided_slice %26 {offsets = [0, 0, 8], sizes = [2, 8, 8], strides = [1, 1, 1]} : vector<2x8x32xf32> to vector<2x8x8xf32>
    %29 = vector.extract_strided_slice %26 {offsets = [0, 0, 16], sizes = [2, 8, 8], strides = [1, 1, 1]} : vector<2x8x32xf32> to vector<2x8x8xf32>
    %30 = vector.extract_strided_slice %26 {offsets = [0, 0, 24], sizes = [2, 8, 8], strides = [1, 1, 1]} : vector<2x8x32xf32> to vector<2x8x8xf32>
    %31 = tpu.concatenate %27, %28, %29, %30 in 0 : vector<2x8x8xf32>, vector<2x8x8xf32>, vector<2x8x8xf32>, vector<2x8x8xf32> -> vector<8x8x8xf32>
    %32 = vector.shape_cast %13 : vector<16x32xf32> to vector<2x8x32xf32>
    %33 = vector.extract_strided_slice %32 {offsets = [0, 0, 0], sizes = [2, 8, 8], strides = [1, 1, 1]} : vector<2x8x32xf32> to vector<2x8x8xf32>
    %34 = vector.extract_strided_slice %32 {offsets = [0, 0, 8], sizes = [2, 8, 8], strides = [1, 1, 1]} : vector<2x8x32xf32> to vector<2x8x8xf32>
    %35 = vector.extract_strided_slice %32 {offsets = [0, 0, 16], sizes = [2, 8, 8], strides = [1, 1, 1]} : vector<2x8x32xf32> to vector<2x8x8xf32>
    %36 = vector.extract_strided_slice %32 {offsets = [0, 0, 24], sizes = [2, 8, 8], strides = [1, 1, 1]} : vector<2x8x32xf32> to vector<2x8x8xf32>
    %37 = tpu.concatenate %33, %34, %35, %36 in 0 : vector<2x8x8xf32>, vector<2x8x8xf32>, vector<2x8x8xf32>, vector<2x8x8xf32> -> vector<8x8x8xf32>
    "tpu.trace_start"() <{level = 10 : i32, message = "bqd,bkd->bqk"}> : () -> ()
    %cst_9 = arith.constant dense<0.000000e+00> : vector<8x8x8xf32>
    %38 = tpu.matmul %25, %31, %cst_9 {dimension_numbers = #tpu.dot_dimension_numbers<[2], [2], [1], [1], [0, 0, 0, 1, 1, 1], [0], [0]>} : vector<8x8x8xf32>, vector<8x8x8xf32>, vector<8x8x8xf32> -> vector<8x8x8xf32>
    "tpu.trace_stop"() : () -> ()
    %cst_10 = arith.constant 0.353553385 : f32
    %39 = vector.broadcast %cst_10 : f32 to vector<8x8x8xf32>
    %40 = arith.mulf %38, %39 : vector<8x8x8xf32>
    %cst_11 = arith.constant dense<0xFF800000> : vector<8x8xf32>
    %41 = vector.multi_reduction <maximumf>, %40, %cst_11 [2] : vector<8x8x8xf32> to vector<8x8xf32>
    %42 = vector.shape_cast %41 : vector<8x8xf32> to vector<8x8x1xf32>
    %43 = vector.broadcast %42 : vector<8x8x1xf32> to vector<8x8x8xf32>
    %44 = arith.subf %40, %43 : vector<8x8x8xf32>
    %45 = math.exp %44 : vector<8x8x8xf32>
    %cst_12 = arith.constant dense<0.000000e+00> : vector<8x8xf32>
    %46 = vector.multi_reduction <add>, %45, %cst_12 [2] : vector<8x8x8xf32> to vector<8x8xf32>
    %47 = vector.shape_cast %46 : vector<8x8xf32> to vector<8x8x1xf32>
    %48 = tpu.reciprocal %47 {approx = true} : vector<8x8x1xf32> -> vector<8x8x1xf32>
    %49 = vector.broadcast %48 : vector<8x8x1xf32> to vector<8x8x8xf32>
    %50 = arith.mulf %45, %49 : vector<8x8x8xf32>
    "tpu.trace_start"() <{level = 10 : i32, message = "bqk,bkd->bqd"}> : () -> ()
    %cst_13 = arith.constant dense<0.000000e+00> : vector<8x8x8xf32>
    %51 = tpu.matmul %50, %37, %cst_13 {dimension_numbers = #tpu.dot_dimension_numbers<[2], [1], [1], [2], [0, 0, 0, 1, 1, 2], [0], [0]>} : vector<8x8x8xf32>, vector<8x8x8xf32>, vector<8x8x8xf32> -> vector<8x8x8xf32>
    "tpu.trace_stop"() : () -> ()
    %52 = vector.extract_strided_slice %51 {offsets = [0, 0, 0], sizes = [2, 8, 8], strides = [1, 1, 1]} : vector<8x8x8xf32> to vector<2x8x8xf32>
    %53 = vector.extract_strided_slice %51 {offsets = [2, 0, 0], sizes = [2, 8, 8], strides = [1, 1, 1]} : vector<8x8x8xf32> to vector<2x8x8xf32>
    %54 = vector.extract_strided_slice %51 {offsets = [4, 0, 0], sizes = [2, 8, 8], strides = [1, 1, 1]} : vector<8x8x8xf32> to vector<2x8x8xf32>
    %55 = vector.extract_strided_slice %51 {offsets = [6, 0, 0], sizes = [2, 8, 8], strides = [1, 1, 1]} : vector<8x8x8xf32> to vector<2x8x8xf32>
    %56 = tpu.concatenate %52, %53, %54, %55 in 2 : vector<2x8x8xf32>, vector<2x8x8xf32>, vector<2x8x8xf32>, vector<2x8x8xf32> -> vector<2x8x32xf32>
    %57 = vector.shape_cast %56 : vector<2x8x32xf32> to vector<16x32xf32>
    %c0_14 = arith.constant 0 : index
    %c0_15 = arith.constant 0 : index
    %c0_16 = arith.constant 0 : index
    %58 = vector.load %arg4[%c0_14, %c0_15, %c0_16] : memref<1x32x32xf32, #tpu.memory_space<vmem>>, vector<1x32x32xf32>
    %59 = vector.shape_cast %58 : vector<1x32x32xf32> to vector<32x32xf32>
    %cst_17 = arith.constant dense<0.000000e+00> : vector<16x32xf32>
    %60 = tpu.matmul %57, %59, %cst_17 {dimension_numbers = #tpu.dot_dimension_numbers<[1], [0], [0], [1], [0, 0, 1, 1], [], []>} : vector<16x32xf32>, vector<32x32xf32>, vector<16x32xf32> -> vector<16x32xf32>
    %c0_18 = arith.constant 0 : index
    %c0_19 = arith.constant 0 : index
    %c0_20 = arith.constant 0 : index
    %61 = vector.load %arg5[%c0_18, %c0_19, %c0_20] : memref<1x1x32xf32, #tpu.memory_space<vmem>>, vector<1x1x32xf32>
    %62 = vector.shape_cast %61 : vector<1x1x32xf32> to vector<1x32xf32>
    %63 = vector.broadcast %62 : vector<1x32xf32> to vector<16x32xf32>
    %64 = arith.addf %60, %63 : vector<16x32xf32>
    %c0_21 = arith.constant 0 : index
    %c0_22 = arith.constant 0 : index
    %c0_23 = arith.constant 0 : index
    %65 = vector.load %arg6[%c0_21, %c0_22, %c0_23] : memref<1x1x32xf32, #tpu.memory_space<vmem>>, vector<1x1x32xf32>
    %66 = vector.shape_cast %65 : vector<1x1x32xf32> to vector<1x32xf32>
    %c0_24 = arith.constant 0 : index
    %c0_25 = arith.constant 0 : index
    %c0_26 = arith.constant 0 : index
    %67 = vector.load %arg7[%c0_24, %c0_25, %c0_26] : memref<1x1x32xf32, #tpu.memory_space<vmem>>, vector<1x1x32xf32>
    %68 = vector.shape_cast %67 : vector<1x1x32xf32> to vector<1x32xf32>
    %cst_27 = arith.constant dense<0.000000e+00> : vector<16xf32>
    %69 = vector.multi_reduction <add>, %64, %cst_27 [1] : vector<16x32xf32> to vector<16xf32>
    %70 = vector.shape_cast %69 : vector<16xf32> to vector<16x1xf32>
    %cst_28 = arith.constant 3.200000e+01 : f32
    %71 = vector.broadcast %cst_28 : f32 to vector<16x1xf32>
    %72 = arith.divf %70, %71 : vector<16x1xf32>
    %73 = vector.broadcast %72 : vector<16x1xf32> to vector<16x32xf32>
    %74 = arith.subf %64, %73 : vector<16x32xf32>
    %75 = arith.mulf %74, %74 : vector<16x32xf32>
    %cst_29 = arith.constant dense<0.000000e+00> : vector<16xf32>
    %76 = vector.multi_reduction <add>, %75, %cst_29 [1] : vector<16x32xf32> to vector<16xf32>
    %77 = vector.shape_cast %76 : vector<16xf32> to vector<16x1xf32>
    %cst_30 = arith.constant 3.200000e+01 : f32
    %78 = vector.broadcast %cst_30 : f32 to vector<16x1xf32>
    %79 = arith.divf %77, %78 : vector<16x1xf32>
    %80 = vector.broadcast %72 : vector<16x1xf32> to vector<16x32xf32>
    %81 = arith.subf %64, %80 : vector<16x32xf32>
    %cst_31 = arith.constant 9.99999974E-6 : f32
    %82 = vector.broadcast %cst_31 : f32 to vector<16x1xf32>
    %83 = arith.addf %79, %82 : vector<16x1xf32>
    %84 = math.rsqrt %83 : vector<16x1xf32>
    %85 = vector.broadcast %84 : vector<16x1xf32> to vector<16x32xf32>
    %86 = arith.mulf %81, %85 : vector<16x32xf32>
    %87 = vector.broadcast %66 : vector<1x32xf32> to vector<16x32xf32>
    %88 = arith.mulf %86, %87 : vector<16x32xf32>
    %89 = vector.broadcast %68 : vector<1x32xf32> to vector<16x32xf32>
    %90 = arith.addf %88, %89 : vector<16x32xf32>
    %91 = arith.mulf %19, %90 : vector<16x32xf32>
    %cst_32 = arith.constant 1.000000e+00 : f32
    %92 = vector.broadcast %cst_32 : f32 to vector<16x32xf32>
    %93 = arith.subf %92, %19 : vector<16x32xf32>
    %94 = arith.mulf %93, %3 : vector<16x32xf32>
    %95 = arith.addf %91, %94 : vector<16x32xf32>
    %c0_33 = arith.constant 0 : index
    %c0_34 = arith.constant 0 : index
    %c0_35 = arith.constant 0 : index
    %96 = vector.load %arg8[%c0_33, %c0_34, %c0_35] : memref<1x32x128xf32, #tpu.memory_space<vmem>>, vector<1x32x128xf32>
    %97 = vector.shape_cast %96 : vector<1x32x128xf32> to vector<32x128xf32>
    %cst_36 = arith.constant dense<0.000000e+00> : vector<16x128xf32>
    %98 = tpu.matmul %95, %97, %cst_36 {dimension_numbers = #tpu.dot_dimension_numbers<[1], [0], [0], [1], [0, 0, 1, 1], [], []>} : vector<16x32xf32>, vector<32x128xf32>, vector<16x128xf32> -> vector<16x128xf32>
    %c0_37 = arith.constant 0 : index
    %c0_38 = arith.constant 0 : index
    %c0_39 = arith.constant 0 : index
    %99 = vector.load %arg9[%c0_37, %c0_38, %c0_39] : memref<1x1x128xf32, #tpu.memory_space<vmem>>, vector<1x1x128xf32>
    %100 = vector.shape_cast %99 : vector<1x1x128xf32> to vector<1x128xf32>
    %101 = vector.broadcast %100 : vector<1x128xf32> to vector<16x128xf32>
    %102 = arith.addf %98, %101 : vector<16x128xf32>
    %103 = vector.extract_strided_slice %102 {offsets = [0, 0], sizes = [16, 64], strides = [1, 1]} : vector<16x128xf32> to vector<16x64xf32>
    %cst_40 = arith.constant 0.000000e+00 : f32
    %104 = vector.broadcast %cst_40 : f32 to vector<16x64xf32>
    %105 = arith.maximumf %103, %104 : vector<16x64xf32>
    %106 = vector.extract_strided_slice %102 {offsets = [0, 64], sizes = [16, 32], strides = [1, 1]} : vector<16x128xf32> to vector<16x32xf32>
    %107 = arith.negf %106 : vector<16x32xf32>
    %108 = math.exp %107 : vector<16x32xf32>
    %cst_41 = arith.constant 1.000000e+00 : f32
    %109 = vector.broadcast %cst_41 : f32 to vector<16x32xf32>
    %110 = arith.addf %109, %108 : vector<16x32xf32>
    %111 = arith.divf %109, %110 : vector<16x32xf32>
    %c0_42 = arith.constant 0 : index
    %c0_43 = arith.constant 0 : index
    %c0_44 = arith.constant 0 : index
    %112 = vector.load %arg10[%c0_42, %c0_43, %c0_44] : memref<1x64x32xf32, #tpu.memory_space<vmem>>, vector<1x64x32xf32>
    %113 = vector.shape_cast %112 : vector<1x64x32xf32> to vector<64x32xf32>
    %cst_45 = arith.constant dense<0.000000e+00> : vector<16x32xf32>
    %114 = tpu.matmul %105, %113, %cst_45 {dimension_numbers = #tpu.dot_dimension_numbers<[1], [0], [0], [1], [0, 0, 1, 1], [], []>} : vector<16x64xf32>, vector<64x32xf32>, vector<16x32xf32> -> vector<16x32xf32>
    %c0_46 = arith.constant 0 : index
    %c0_47 = arith.constant 0 : index
    %c0_48 = arith.constant 0 : index
    %115 = vector.load %arg11[%c0_46, %c0_47, %c0_48] : memref<1x1x32xf32, #tpu.memory_space<vmem>>, vector<1x1x32xf32>
    %116 = vector.shape_cast %115 : vector<1x1x32xf32> to vector<1x32xf32>
    %117 = vector.broadcast %116 : vector<1x32xf32> to vector<16x32xf32>
    %118 = arith.addf %114, %117 : vector<16x32xf32>
    %c0_49 = arith.constant 0 : index
    %c0_50 = arith.constant 0 : index
    %c0_51 = arith.constant 0 : index
    %119 = vector.load %arg12[%c0_49, %c0_50, %c0_51] : memref<1x1x32xf32, #tpu.memory_space<vmem>>, vector<1x1x32xf32>
    %120 = vector.shape_cast %119 : vector<1x1x32xf32> to vector<1x32xf32>
    %c0_52 = arith.constant 0 : index
    %c0_53 = arith.constant 0 : index
    %c0_54 = arith.constant 0 : index
    %121 = vector.load %arg13[%c0_52, %c0_53, %c0_54] : memref<1x1x32xf32, #tpu.memory_space<vmem>>, vector<1x1x32xf32>
    %122 = vector.shape_cast %121 : vector<1x1x32xf32> to vector<1x32xf32>
    %cst_55 = arith.constant dense<0.000000e+00> : vector<16xf32>
    %123 = vector.multi_reduction <add>, %118, %cst_55 [1] : vector<16x32xf32> to vector<16xf32>
    %124 = vector.shape_cast %123 : vector<16xf32> to vector<16x1xf32>
    %cst_56 = arith.constant 3.200000e+01 : f32
    %125 = vector.broadcast %cst_56 : f32 to vector<16x1xf32>
    %126 = arith.divf %124, %125 : vector<16x1xf32>
    %127 = vector.broadcast %126 : vector<16x1xf32> to vector<16x32xf32>
    %128 = arith.subf %118, %127 : vector<16x32xf32>
    %129 = arith.mulf %128, %128 : vector<16x32xf32>
    %cst_57 = arith.constant dense<0.000000e+00> : vector<16xf32>
    %130 = vector.multi_reduction <add>, %129, %cst_57 [1] : vector<16x32xf32> to vector<16xf32>
    %131 = vector.shape_cast %130 : vector<16xf32> to vector<16x1xf32>
    %cst_58 = arith.constant 3.200000e+01 : f32
    %132 = vector.broadcast %cst_58 : f32 to vector<16x1xf32>
    %133 = arith.divf %131, %132 : vector<16x1xf32>
    %134 = vector.broadcast %126 : vector<16x1xf32> to vector<16x32xf32>
    %135 = arith.subf %118, %134 : vector<16x32xf32>
    %cst_59 = arith.constant 9.99999974E-6 : f32
    %136 = vector.broadcast %cst_59 : f32 to vector<16x1xf32>
    %137 = arith.addf %133, %136 : vector<16x1xf32>
    %138 = math.rsqrt %137 : vector<16x1xf32>
    %139 = vector.broadcast %138 : vector<16x1xf32> to vector<16x32xf32>
    %140 = arith.mulf %135, %139 : vector<16x32xf32>
    %141 = vector.broadcast %120 : vector<1x32xf32> to vector<16x32xf32>
    %142 = arith.mulf %140, %141 : vector<16x32xf32>
    %143 = vector.broadcast %122 : vector<1x32xf32> to vector<16x32xf32>
    %144 = arith.addf %142, %143 : vector<16x32xf32>
    %145 = arith.mulf %111, %144 : vector<16x32xf32>
    %cst_60 = arith.constant 1.000000e+00 : f32
    %146 = vector.broadcast %cst_60 : f32 to vector<16x32xf32>
    %147 = arith.subf %146, %111 : vector<16x32xf32>
    %148 = arith.mulf %147, %95 : vector<16x32xf32>
    %149 = arith.addf %145, %148 : vector<16x32xf32>
    %c0_61 = arith.constant 0 : index
    %c0_62 = arith.constant 0 : index
    %150 = vector.load %arg15[%c0_61, %c0_62] : memref<16x32xf32, #tpu.memory_space<vmem>>, vector<16x32xf32>
    tpu.vector_store %arg15[%c0_61, %c0_62], %149 {strides = array<i32>} : memref<16x32xf32, #tpu.memory_space<vmem>>, vector<16x32xf32>,
    %151 = vector.shape_cast %149 : vector<16x32xf32> to vector<2x8x32xf32>
    %c0_63 = arith.constant 0 : index
    %c0_64 = arith.constant 0 : index
    %c0_65 = arith.constant 0 : index
    %152 = vector.load %arg14[%c0_63, %c0_64, %c0_65] : memref<2x8x32xf32, #tpu.memory_space<vmem>>, vector<2x8x32xf32>
    tpu.vector_store %arg14[%c0_63, %c0_64, %c0_65], %151 {strides = array<i32>} : memref<2x8x32xf32, #tpu.memory_space<vmem>>, vector<2x8x32xf32>,
    return
  }
  func.func @transform_0(%arg0: i32) -> (i32, i32, i32) {
    %c0_i32 = arith.constant 0 : i32
    %c0_i32_0 = arith.constant 0 : i32
    %c0_i32_1 = arith.constant 0 : i32
    %c0_i32_2 = arith.constant 0 : i32
    return %c0_i32, %c0_i32_0, %c0_i32_1 : i32, i32, i32
  }
  func.func @transform_1(%arg0: i32) -> (i32, i32, i32) {
    %c0_i32 = arith.constant 0 : i32
    %c0_i32_0 = arith.constant 0 : i32
    %c0_i32_1 = arith.constant 0 : i32
    return %arg0, %c0_i32, %c0_i32_0 : i32, i32, i32
  }
  func.func @transform_2(%arg0: i32) -> (i32, i32, i32) {
    %c0_i32 = arith.constant 0 : i32
    %c0_i32_0 = arith.constant 0 : i32
    %c0_i32_1 = arith.constant 0 : i32
    return %arg0, %c0_i32, %c0_i32_0 : i32, i32, i32
  }
  func.func @transform_3(%arg0: i32) -> (i32, i32, i32) {
    %c0_i32 = arith.constant 0 : i32
    %c0_i32_0 = arith.constant 0 : i32
    %c0_i32_1 = arith.constant 0 : i32
    return %arg0, %c0_i32, %c0_i32_0 : i32, i32, i32
  }
  func.func @transform_4(%arg0: i32) -> (i32, i32, i32) {
    %c0_i32 = arith.constant 0 : i32
    %c0_i32_0 = arith.constant 0 : i32
    %c0_i32_1 = arith.constant 0 : i32
    return %arg0, %c0_i32, %c0_i32_0 : i32, i32, i32
  }
  func.func @transform_5(%arg0: i32) -> (i32, i32, i32) {
    %c0_i32 = arith.constant 0 : i32
    %c0_i32_0 = arith.constant 0 : i32
    %c0_i32_1 = arith.constant 0 : i32
    return %arg0, %c0_i32, %c0_i32_0 : i32, i32, i32
  }
  func.func @transform_6(%arg0: i32) -> (i32, i32, i32) {
    %c0_i32 = arith.constant 0 : i32
    %c0_i32_0 = arith.constant 0 : i32
    %c0_i32_1 = arith.constant 0 : i32
    return %arg0, %c0_i32, %c0_i32_0 : i32, i32, i32
  }
  func.func @transform_7(%arg0: i32) -> (i32, i32, i32) {
    %c0_i32 = arith.constant 0 : i32
    %c0_i32_0 = arith.constant 0 : i32
    %c0_i32_1 = arith.constant 0 : i32
    return %arg0, %c0_i32, %c0_i32_0 : i32, i32, i32
  }
  func.func @transform_8(%arg0: i32) -> (i32, i32, i32) {
    %c0_i32 = arith.constant 0 : i32
    %c0_i32_0 = arith.constant 0 : i32
    %c0_i32_1 = arith.constant 0 : i32
    return %arg0, %c0_i32, %c0_i32_0 : i32, i32, i32
  }
  func.func @transform_9(%arg0: i32) -> (i32, i32, i32) {
    %c0_i32 = arith.constant 0 : i32
    %c0_i32_0 = arith.constant 0 : i32
    %c0_i32_1 = arith.constant 0 : i32
    return %arg0, %c0_i32, %c0_i32_0 : i32, i32, i32
  }
  func.func @transform_10(%arg0: i32) -> (i32, i32, i32) {
    %c0_i32 = arith.constant 0 : i32
    %c0_i32_0 = arith.constant 0 : i32
    %c0_i32_1 = arith.constant 0 : i32
    return %arg0, %c0_i32, %c0_i32_0 : i32, i32, i32
  }
  func.func @transform_11(%arg0: i32) -> (i32, i32, i32) {
    %c0_i32 = arith.constant 0 : i32
    %c0_i32_0 = arith.constant 0 : i32
    %c0_i32_1 = arith.constant 0 : i32
    return %arg0, %c0_i32, %c0_i32_0 : i32, i32, i32
  }
  func.func @transform_12(%arg0: i32) -> (i32, i32, i32) {
    %c0_i32 = arith.constant 0 : i32
    %c0_i32_0 = arith.constant 0 : i32
    %c0_i32_1 = arith.constant 0 : i32
    return %arg0, %c0_i32, %c0_i32_0 : i32, i32, i32
  }
  func.func @transform_13(%arg0: i32) -> (i32, i32, i32) {
    %c0_i32 = arith.constant 0 : i32
    %c0_i32_0 = arith.constant 0 : i32
    %c0_i32_1 = arith.constant 0 : i32
    %c0_i32_2 = arith.constant 0 : i32
    return %c0_i32, %c0_i32_0, %c0_i32_1 : i32, i32, i32
  }
}

</mosaic_0001>

<bundles_post_ra>
// kernel: tpu_custom_call.1
= control target key start
LH: loop header
LB: loop body
LE: loop exit
PB: predicated region body
PF: predicated region fallthrough
CT: control target
= control target key end

     0   :  { %s3647_s0 = inlined_call_operand.hbm [shape: f32[2,8,32], index: 0, kind: input, shape index: {}]   ;;  %s3648_s1 = inlined_call_operand.vmem [shape: f32[2,32,128], index: 1, kind: input, shape index: {}]   ;;  %s3649_s2 = inlined_call_operand.vmem [shape: f32[2,1,128], index: 2, kind: input, shape index: {}]   ;;  %s3650_s3 = inlined_call_operand.vmem [shape: f32[2,32,32], index: 3, kind: input, shape index: {}]   ;;  %s3651_s4 = inlined_call_operand.vmem [shape: f32[2,1,32], index: 4, kind: input, shape index: {}]   ;;  %s3652_s5 = inlined_call_operand.vmem [shape: f32[2,1,32], index: 5, kind: input, shape index: {}]   ;;  %s3653_s6 = inlined_call_operand.vmem [shape: f32[2,1,32], index: 6, kind: input, shape index: {}]   ;;  %s3654_s7 = inlined_call_operand.vmem [shape: f32[2,32,128], index: 7, kind: input, shape index: {}]   ;;  %s3655_s8 = inlined_call_operand.vmem [shape: f32[2,1,128], index: 8, kind: input, shape index: {}]   ;;  %s3656_s9 = inlined_call_operand.vmem [shape: f32[2,64,32], index: 9, kind: input, shape index: {}]   ;;  %s3657_s10 = inlined_call_operand.vmem [shape: f32[2,1,32], index: 10, kind: input, shape index: {}]   ;;  %s3658_s11 = inlined_call_operand.vmem [shape: f32[2,1,32], index: 11, kind: input, shape index: {}]   ;;  %s3659_s12 = inlined_call_operand.vmem [shape: f32[2,1,32], index: 12, kind: input, shape index: {}]   ;;  %s3660_s13 = inlined_call_operand.hbm [shape: f32[2,8,32], index: 13, kind: output, shape index: {}]  }
   0x1   :  { %3665 = sst [smem:[#allocation10_spill]] %s3647_s0 }
   0x2   :  { %3666 = sst [smem:[#allocation11_spill]] %s3648_s1 }
   0x3   :  { %3667 = sst [smem:[#allocation12_spill]] %s3650_s3 }
   0x4   :  { %3668 = sst [smem:[#allocation13_spill]] %s3660_s13 }
   0x5   :  { %18 = vsyncpa [#allocation4], 0 }
   0x6   :  { %19 = vsyncpa [#allocation5], 0  ;;  %s3252_s25 = smov 0  }
   0x7 LB: > { %3669 = sst [smem:[#allocation9_spill]] %s3164_s25  ;;  %s3258_s26 = sadd.s32 4294967295, %s3164_s25   ;;  %s3164_s25 = sphi %s3252_s25, %s25_s25  }
   0x8   : > { %p2702_p0 = scmp.ge.s32.totalorder %s3164_s25, 1  ;;  %p384_p1 = scmp.lt.s32.totalorder %s3164_s25, 3 }
   0x9   : > { %s3166_s27 = smov [#allocation3]   ;;  %p3661_p4 = scmp.eq.s32.totalorder %s3258_s26, 0 }
   0xa   : > { %s396_s28 = sshll.u32 %s3166_s27, 4  ;;  %p3263_p3 = pnand %p2702_p0, %p384_p1  ;;  %s397_s28 = int_to_ptr.vmem [resolvable:$true] %s396_s28 }
   0xb   : > { %s3672_s0 = sld [smem:[#allocation10_spill]] }
   0xc   : > { %s3670_s29 = scalar_select %p3263_p3, 1, 0 }
   0xd   : > { %p3008_p5 = pneg %p3263_p3 }
   0xf   : > { %p3272_p6 = pnand %p3661_p4, %p3008_p5 }
  0x11   : > { %s3096_s16 = scalar_lea.hbm %s3672_s0, 256  ;;  %p3098_p8 = pneg %p3272_p6 }
  0x12   : > { %p3097_p7 = scmp.ne.s32.totalorder %s3672_s0, %s3096_s16  ;;  %p3103_p11 = scmp.lt.u32.totalorder %s3096_s16, %s3672_s0 }
  0x14   : > { %p3099_p9 = pnand %p3098_p8, %p3097_p7 }
  0x16   : > { %p3100_p10 = pneg %p3099_p9 }
  0x18   : > { %p3105_p12 = pnand %p3103_p11, %p3100_p10 }
  0x1a   : > { %3108 = shalt.err (!%p3105_p12)
}
  0x1b   : > { %s3109_s21 = scalar_lea.vmem %s397_s28, 256  ;;  %p3117_p5 = scmp.lt.s32.totalorder %s397_s28, %s397_s28 }
  0x1c   : > { %p3110_p13 = scmp.ne.s32.totalorder %s397_s28, %s3109_s21  ;;  %p3118_p2 = scmp.lt.s32.totalorder %s3109_s21, %s3109_s21 }
  0x1e   : > { %p3112_p0 = pnand %p3110_p13, %p3098_p8  ;;  %p3119_p4 = por %p3118_p2, %p3117_p5 }
  0x20   : > { %p3113_p1 = pneg %p3112_p0 }
  0x22   : > { %p3120_p3 = pnand %p3119_p4, %p3113_p1 }
  0x24   : > { %3123 = shalt.err (!%p3120_p3)
}
  0x25   : > { %s3167_s22 = smov 128   ;;  %s3168_s23 = smov 8  }
  0x26   : > { %3011 = dma.hbm_to_vmem [thread:$0]  (!%p3272_p6), %s3672_s0, 256, %s397_s28, [#allocation4], %s3167_s22, %s3167_s22, %s3168_s23  }
  0x27   : > { %p3673_p7 = scmp.ne.s32.totalorder %s3670_s29, 0 }
  0x28   : > { %p3674_p9 = scmp.eq.s32.totalorder (!%p3673_p7), %s3258_s26, 0 }
  0x29   : > { %492 = sbr.rel (%p3673_p7) target bundleno = 3167 (0xc5f), region = 72 }
  0x30   : > { %3155 = dma.done.wait (%p3674_p9), [#allocation4], 256   ;;  %p3675_p8 = pmov %p3674_p9 }
  0x31   : > { %p570_p2 = scmp.lt.s32.totalorder %s3258_s26, 1  ;;  %s3676_s1 = sld [smem:[#allocation11_spill]] }
  0x32   : > { %3157 = vsyncadd (%p3675_p8), [#allocation4], 4294967040  ;;  %s3677_s3 = sld [smem:[#allocation12_spill]]  ;;  %p3678_p3 = scmp.ne.s32.totalorder %s3258_s26, 0 }
  0x33   : > { %s3300_s14 = scalar_select %p570_p2, %s3258_s26, 1 }
  0x34   : > { %617 = sbr.rel (%p3678_p3) target bundleno = 59 (0x3b), region = 80  ;;  %v618_v0 = vld [vmem:[#allocation3] sm:$0xff] (!%p3678_p3)  ;;  %vm620_vm0 = vcmask (!%p3678_p3), 261120   ;;  %v619_v1 = vld [vmem:[#allocation3 + $0x8] sm:$0xff] (!%p3678_p3) }
  0x35   : > { %s2764_s28 = sshll.u32 %s3300_s14, 5  ;;  %s607_s13 = scalar_lea.vmem %s3657_s10, %s3300_s14  ;;  %621 = vst.msk [vmem:[#allocation2] sm:$0xff] (!%p3678_p3), %vm620_vm0, %v618_v0  ;;  %622 = vst.msk [vmem:[#allocation2 + $0x8] sm:$0xff] (!%p3678_p3), %vm620_vm0, %v619_v1 }
  0x36   : > { %s3330_s17 = scalar_lea.vmem %s3654_s7, %s2764_s28  ;;  %s610_s15 = scalar_lea.vmem %s3658_s11, %s3300_s14 }
  0x37   : > { %s574_s18 = scalar_lea.vmem %s3676_s1, %s2764_s28  ;;  %s599_s1 = scalar_lea.vmem %s3655_s8, %s3300_s14 }
  0x38   : > { %s3313_s21 = scalar_lea.vmem %s3677_s3, %s2764_s28  ;;  %s2767_s3 = sshll.u32 %s3300_s14, 6 }
  0x39   : > { %s3340_s24 = scalar_lea.vmem %s3656_s9, %s2767_s3  ;;  %s613_s25 = scalar_lea.vmem %s3659_s12, %s3300_s14 }
  0x3b PF: > { %v625_v2 = vld [vmem:[%s574_s18] sm:$0xff]  ;;  %v626_v3 = vld [vmem:[%s574_s18 + $0x8] sm:$0xff]  ;;  %v627_v4 = vld [vmem:[%s574_s18 + $0x10] sm:$0xff]  ;;  %vm636_vm1 = vcmask 261120   ;;  %s3679_s19 = scalar_lea.vmem %s3649_s2, %s3300_s14  ;;  %v3169_v12 = vmov 0.0   ;;  %s3171_s20 = smov 120  }
  0x3c   : > { %v2960_v5 = vpack.c.bf16 %v626_v3, %v625_v2  ;;  %v628_v6 = vld [vmem:[%s574_s18 + $0x18] sm:$0xff]  ;;  %v3356_v7 = vld [vmem:[#allocation2] sm:$0xff]  ;;  %v3360_v9 = vld [vmem:[#allocation2 + $0x8] sm:$0xff]  ;;  %2849 = vmatprep.subr.mxu0 %v3169_v12  ;;  %s3170_s18 = smov 112   ;;  %vm3172_vm2 = vmmov 0   ;;  %s3173_s22 = smov 104  }
  0x3d   : > { %v2964_v8 = vpack.c.bf16 %v628_v6, %v627_v4  ;;  %2836 = vmatprep.mubr.msk.f32.mxu1 %vm636_vm1, %v3356_v7  ;;  %v2716_v10 = vld [vmem:[%s3679_s19] ss:$0 sm:$0xff]  ;;  %2851 = vmatprep.mubr.msk.f32.mxu0 %vm3172_vm2, %v3169_v12  ;;  %s3174_s23 = smov 96   ;;  %vm746_vm3 = vcmask 64512   ;;  %s3175_s0 = smov 64   ;;  %vm2083_vm4 = vcmask 130048  }
  0x3e   : > { %2961 = vmatprep.subr.bf16.mxu1 %v2960_v5  ;;  %s3176_s27 = smov 8   ;;  %s3177_s29 = smov 16   ;;  %vm2086_vm5 = vcmask 195584   ;;  %vm2373_vm6 = vcmask 523264  }
  0x3f   : > { %2963 = vmatpush3.bf16.msra.mxu1 %v2960_v5  ;;  %s3178_s28 = smov 24   ;;  %s3680_s3 = scalar_lea.vmem %s3651_s4, %s3300_s14 }
  0x40   : > { %2965 = vmatprep.subr.bf16.mxu1 %v2964_v8  ;;  %p3014_p4 = scmp.eq.s32.totalorder %s3258_s26, 1 }
  0x43   : > { %2967 = vmatpush3.bf16.msra.mxu1 %v2964_v8 }
  0x44   : > { %2839 = vmatprep.subr.mxu1 %v3169_v12 }
  0x46   : > { %2837 = vmatmul.mubr.msk.f32.vlgmr.msra.gmra.mrb[0].mxu1 %vm636_vm1, %v3360_v9 }
  0x47   : > { %2841 = vmatprep.mubr.msk.f32.mxu1 %vm3172_vm2, %v3169_v12 }
 0x119   : > { %v2838_v11 = vpop.f32.mrb[0].mxu1 }
 0x11a   : > { %v709_v13 = vpop.f32.mrb[1].mxu1  ;;  %v3379_v15 = vadd.f32 %v2838_v11, %v2716_v10 }
 0x11b   : > { %v3371_v14 = vadd.f32 %v2716_v10, %v709_v13 }
 0x11d   : > { %736 = vrot.lane.b32.xlu1 %v3371_v14, %s3170_s18  ;;  %732 = vrot.lane.b32.xlu0 %v3371_v14, %s3171_s20 }
 0x121   : > { %738 = vrot.lane.b32.xlu1 %v3379_v15, %s3170_s18  ;;  %734 = vrot.lane.b32.xlu0 %v3379_v15, %s3171_s20  ;;  %s3681_s18 = scalar_lea.vmem %s3652_s5, %s3300_s14 }
 0x125   : > { %742 = vrot.lane.b32.xlu1 %v3379_v15, %s3173_s22  ;;  %740 = vrot.lane.b32.xlu0 %v3371_v14, %s3173_s22 }
 0x129   : > { %821 = vrot.lane.b32.xlu1 %v3379_v15, %s3174_s23  ;;  %744 = vrot.lane.b32.xlu0 %v3371_v14, %s3174_s23 }
 0x18f   : > { %v3389_v16 = vpop.permute.xlu1 %736  ;;  %v3391_v17 = vpop.permute.xlu0 %732 }
 0x190   : > { %897 = vrot.lane.b32.xlu0 %v3391_v17, %s3174_s23 }
 0x193   : > { %v3395_v18 = vpop.permute.xlu1 %738  ;;  %v3397_v19 = vpop.permute.xlu0 %734 }
 0x194   : > { %1049 = vrot.lane.b32.xlu0 %v3389_v16, %s3174_s23  ;;  %973 = vrot.lane.b32.xlu1 %v3397_v19, %s3174_s23 }
 0x197   : > { %v3403_v20 = vpop.permute.xlu0 %740  ;;  %v3409_v21 = vpop.permute.xlu1 %742 }
 0x198   : > { %1125 = vrot.lane.b32.xlu1 %v3395_v18, %s3174_s23  ;;  %1201 = vrot.lane.b32.xlu0 %v3403_v20, %s3174_s23 }
 0x19b   : > { %v745_v22 = vpop.permute.xlu0 %744  ;;  %v822_v23 = vpop.permute.xlu1 %821 }
 0x19c   : > { %1277 = vrot.lane.b32.xlu1 %v3409_v21, %s3174_s23  ;;  %2840 = vmatpush3.xpose.msk.msra.mxu1 %vm746_vm3, %v745_v22 }
 0x19d   : > { %2844 = vmatprep.subr.mxu1 %v3169_v12 }
 0x19f   : > { %2842 = vmatmul.mubr.msk.f32.vlgmr.msra.gmra.mrb[2].mxu1 %vm746_vm3, %v3371_v14 }
 0x1a0   : > { %2845 = vmatpush3.xpose.msk.msra.mxu1 %vm746_vm3, %v822_v23  ;;  %2846 = vmatprep.mubr.msk.f32.mxu1 %vm3172_vm2, %v3169_v12 }
 0x1a1   : > { %2854 = vmatprep.subr.mxu1 %v3169_v12 }
 0x1a3   : > { %2847 = vmatmul.mubr.msk.f32.vlgmr.msra.gmra.mrb[4].mxu1 %vm746_vm3, %v3379_v15 }
 0x1a4   : > { %2856 = vmatprep.mubr.msk.f32.mxu1 %vm3172_vm2, %v3169_v12 }
 0x202   : > { %v898_v24 = vpop.permute.xlu0 %897 }
 0x203   : > { %2850 = vmatpush3.xpose.msk.msra.mxu0 %vm746_vm3, %v898_v24 }
 0x204   : > { %2859 = vmatprep.subr.mxu0 %v3169_v12 }
 0x206   : > { %v974_v25 = vpop.permute.xlu1 %973  ;;  %2852 = vmatmul.mubr.msk.f32.vlgmr.msra.gmra.mrb[0].mxu0 %vm746_vm3, %v3391_v17  ;;  %v1050_v26 = vpop.permute.xlu0 %1049 }
 0x207   : > { %2855 = vmatpush3.xpose.msk.msra.mxu1 %vm746_vm3, %v974_v25  ;;  %2860 = vmatpush3.xpose.msk.msra.mxu0 %vm746_vm3, %v1050_v26 }
 0x208   : > { %2861 = vmatprep.mubr.msk.f32.mxu0 %vm3172_vm2, %v3169_v12  ;;  %2864 = vmatprep.subr.mxu1 %v3169_v12 }
 0x209   : > { %2869 = vmatprep.subr.mxu0 %v3169_v12 }
 0x20a   : > { %v1126_v27 = vpop.permute.xlu1 %1125  ;;  %2857 = vmatmul.mubr.msk.f32.vlgmr.msra.gmra.mrb[6].mxu1 %vm746_vm3, %v3397_v19  ;;  %2862 = vmatmul.mubr.msk.f32.vlgmr.msra.gmra.mrb[2].mxu0 %vm746_vm3, %v3389_v16  ;;  %v1202_v28 = vpop.permute.xlu0 %1201 }
 0x20b   : > { %2865 = vmatpush3.xpose.msk.msra.mxu1 %vm746_vm3, %v1126_v27  ;;  %2870 = vmatpush3.xpose.msk.msra.mxu0 %vm746_vm3, %v1202_v28 }
 0x20c   : > { %2866 = vmatprep.mubr.msk.f32.mxu1 %vm3172_vm2, %v3169_v12  ;;  %2871 = vmatprep.mubr.msk.f32.mxu0 %vm3172_vm2, %v3169_v12 }
 0x20d   : > { %2874 = vmatprep.subr.mxu1 %v3169_v12  ;;  %2879 = vmatprep.subr.mxu0 %v3169_v12 }
 0x20e   : > { %v1278_v29 = vpop.permute.xlu1 %1277  ;;  %2867 = vmatmul.mubr.msk.f32.vlgmr.msra.gmra.mrb[8].mxu1 %vm746_vm3, %v3395_v18  ;;  %2872 = vmatmul.mubr.msk.f32.vlgmr.msra.gmra.mrb[4].mxu0 %vm746_vm3, %v3403_v20 }
 0x20f   : > { %2875 = vmatpush3.xpose.msk.msra.mxu1 %vm746_vm3, %v1278_v29  ;;  %2876 = vmatprep.mubr.msk.f32.mxu1 %vm3172_vm2, %v3169_v12 }
 0x210   : > { %2884 = vmatprep.subr.mxu1 %v3169_v12  ;;  %2881 = vmatprep.mubr.msk.f32.mxu0 %vm3172_vm2, %v3169_v12 }
 0x212   : > { %2877 = vmatmul.mubr.msk.f32.vlgmr.msra.gmra.mrb[10].mxu1 %vm746_vm3, %v3409_v21 }
 0x213   : > { %2886 = vmatprep.mubr.msk.f32.mxu1 %vm3172_vm2, %v3169_v12 }
 0x272   : > { %v817_v30 = vpop.f32.mrb[2].mxu1 }
 0x273   : > { %v1353_v31 = vmul.f32 0.35355338, %v817_v30  ;;  %v2843_v32 = vpop.f32.mrb[3].mxu1 }
 0x275   : > { %v1361_v33 = vsel %vm746_vm3, %v1353_v31, -inf }
 0x276   : > { %1362 = vmax.xlane.f32.xlu0 %v1361_v33  ;;  %v893_v34 = vpop.f32.mrb[4].mxu1 }
 0x277   : > { %v1354_v35 = vmul.f32 0.35355338, %v893_v34  ;;  %v2848_v36 = vpop.f32.mrb[5].mxu1 }
 0x279   : > { %v1364_v37 = vsel %vm746_vm3, %v1354_v35, -inf }
 0x27a   : > { %1365 = vmax.xlane.f32.xlu1 %v1364_v37 }
 0x2d9   : > { %v969_v38 = vpop.f32.mrb[0].mxu0 }
 0x2da   : > { %v1355_v39 = vmul.f32 0.35355338, %v969_v38  ;;  %v2853_v40 = vpop.f32.mrb[1].mxu0 }
 0x2dc   : > { %v1367_v41 = vsel %vm746_vm3, %v1355_v39, -inf }
 0x2dd   : > { %v1045_v42 = vpop.f32.mrb[6].mxu1  ;;  %1368 = vmax.xlane.f32.xlu0 %v1367_v41  ;;  %v1121_v43 = vpop.f32.mrb[2].mxu0 }
 0x2de   : > { %v1356_v44 = vmul.f32 0.35355338, %v1045_v42  ;;  %v1357_v45 = vmul.f32 0.35355338, %v1121_v43  ;;  %v2858_v46 = vpop.f32.mrb[7].mxu1  ;;  %v2863_v47 = vpop.f32.mrb[3].mxu0 }
 0x2e0   : > { %v1370_v48 = vsel %vm746_vm3, %v1356_v44, -inf  ;;  %v1373_v49 = vsel %vm746_vm3, %v1357_v45, -inf }
 0x2e1   : > { %v1197_v50 = vpop.f32.mrb[8].mxu1  ;;  %1371 = vmax.xlane.f32.xlu0 %v1370_v48  ;;  %1374 = vmax.xlane.f32.xlu1 %v1373_v49  ;;  %v1273_v51 = vpop.f32.mrb[4].mxu0 }
 0x2e2   : > { %v1358_v52 = vmul.f32 0.35355338, %v1197_v50  ;;  %v1359_v53 = vmul.f32 0.35355338, %v1273_v51  ;;  %v2868_v54 = vpop.f32.mrb[9].mxu1  ;;  %v2873_v55 = vpop.f32.mrb[5].mxu0 }
 0x2e4   : > { %v1376_v56 = vsel %vm746_vm3, %v1358_v52, -inf  ;;  %v1379_v57 = vsel %vm746_vm3, %v1359_v53, -inf }
 0x2e5   : > { %v1349_v58 = vpop.f32.mrb[10].mxu1  ;;  %1377 = vmax.xlane.f32.xlu0 %v1376_v56  ;;  %1380 = vmax.xlane.f32.xlu1 %v1379_v57 }
 0x2e6   : > { %v1360_v59 = vmul.f32 0.35355338, %v1349_v58  ;;  %v2878_v60 = vpop.f32.mrb[11].mxu1 }
 0x2e8   : > { %v1382_v61 = vsel %vm746_vm3, %v1360_v59, -inf }
 0x2e9   : > { %1383 = vmax.xlane.f32.xlu0 %v1382_v61 }
 0x2f6   : > { %1449 = vrot.lane.b32.xlu1 %v3371_v14, %s3175_s0 }
 0x2fa   : > { %1601 = vrot.lane.b32.xlu1 %v3391_v17, %s3175_s0 }
 0x2fe   : > { %1677 = vrot.lane.b32.xlu1 %v3397_v19, %s3175_s0 }
 0x2ff   : > { %1525 = vrot.lane.b32.xlu0 %v3379_v15, %s3175_s0 }
 0x302   : > { %1829 = vrot.lane.b32.xlu1 %v3395_v18, %s3175_s0 }
 0x303   : > { %1753 = vrot.lane.b32.xlu0 %v3389_v16, %s3175_s0  ;;  %v1363_v0 = vpop.xlane.xlu0 %1362 }
 0x304   : > { %v1385_v1 = vsub.f32 %v1353_v31, %v1363_v0 }
 0x306   : > { %v1393_v3 = vmul.f32 1.442695, %v1385_v1 }
 0x307   : > { %v1366_v62 = vpop.xlane.xlu1 %1365 }
 0x308   : > { %v1386_v63 = vsub.f32 %v1354_v35, %v1366_v62 }
 0x30a   : > { %v1395_v2 = vmul.f32 1.442695, %v1386_v63 }
 0x30c   : > { %3040 = vpow2.f32 %v1395_v2 }
 0x30d   : > { %3042 = vpow2.f32 %v1393_v3 }
 0x316   : > { %v3481_v4 = vpop.eup %3040 }
 0x317   : > { %v1412_v5 = vsel %vm746_vm3, %v3481_v4, 0.0  ;;  %v3485_v6 = vpop.eup %3042 }
 0x318   : > { %v1409_v8 = vsel %vm746_vm3, %v3485_v6, 0.0 }
 0x322   : > { %1413 = vadd.xlane.f32.xlu0 %v1412_v5 }
 0x326   : > { %1410 = vadd.xlane.f32.xlu1 %v1409_v8 }
 0x36a   : > { %v1369_v10 = vpop.xlane.xlu0 %1368 }
 0x36b   : > { %v1387_v11 = vsub.f32 %v1355_v39, %v1369_v10 }
 0x36d   : > { %v1397_v13 = vmul.f32 1.442695, %v1387_v11 }
 0x36e   : > { %v1375_v16 = vpop.xlane.xlu1 %1374  ;;  %v1372_v17 = vpop.xlane.xlu0 %1371 }
 0x36f   : > { %3044 = vpow2.f32 %v1397_v13  ;;  %v1389_v18 = vsub.f32 %v1357_v45, %v1375_v16  ;;  %v1388_v19 = vsub.f32 %v1356_v44, %v1372_v17 }
 0x371   : > { %v1401_v22 = vmul.f32 1.442695, %v1389_v18  ;;  %v1399_v23 = vmul.f32 1.442695, %v1388_v19 }
 0x372   : > { %v1381_v24 = vpop.xlane.xlu1 %1380  ;;  %v1378_v25 = vpop.xlane.xlu0 %1377 }
 0x373   : > { %3046 = vpow2.f32 %v1401_v22  ;;  %v1391_v26 = vsub.f32 %v1359_v53, %v1381_v24  ;;  %v1390_v27 = vsub.f32 %v1358_v52, %v1378_v25  ;;  %v2089_v22 = vld [vmem:[%s3313_s21] sm:$0xff]  ;;  %v2091_v25 = vld [vmem:[%s3313_s21 + $0x10] sm:$0xff] }
 0x374   : > { %3048 = vpow2.f32 %v1399_v23  ;;  %v2090_v23 = vld [vmem:[%s3313_s21 + $0x8] sm:$0xff] }
 0x375   : > { %v1405_v28 = vmul.f32 1.442695, %v1391_v26  ;;  %v1403_v29 = vmul.f32 1.442695, %v1390_v27  ;;  %v2968_v24 = vpack.c.bf16 %v2090_v23, %v2089_v22  ;;  %v2092_v26 = vld [vmem:[%s3313_s21 + $0x18] sm:$0xff]  ;;  %v2248_v23 = vld [vmem:[%s3330_s17] sm:$0xff] }
 0x376   : > { %v1450_v30 = vpop.permute.xlu1 %1449  ;;  %v1384_v31 = vpop.xlane.xlu0 %1383  ;;  %v2972_v27 = vpack.c.bf16 %v2092_v26, %v2091_v25 }
 0x377   : > { %3050 = vpow2.f32 %v1405_v28  ;;  %v1392_v32 = vsub.f32 %v1360_v59, %v1384_v31  ;;  %2880 = vmatpush3.msra.mxu0 %v1450_v30 }
 0x378   : > { %3052 = vpow2.f32 %v1403_v29  ;;  %2889 = vmatprep.subr.mxu0 %v3169_v12 }
 0x379   : > { %v3045_v33 = vpop.eup %3044  ;;  %v1407_v34 = vmul.f32 1.442695, %v1392_v32 }
 0x37a   : > { %v1526_v35 = vpop.permute.xlu0 %1525  ;;  %v1415_v36 = vsel %vm746_vm3, %v3045_v33, 0.0  ;;  %v1602_v47 = vpop.permute.xlu1 %1601 }
 0x37b   : > { %3054 = vpow2.f32 %v1407_v34  ;;  %1416 = vadd.xlane.f32.xlu1 %v1415_v36  ;;  %2885 = vmatpush3.msra.mxu1 %v1526_v35 }
 0x37c   : > { %2894 = vmatprep.subr.mxu1 %v3169_v12 }
 0x37d   : > { %v3047_v37 = vpop.eup %3046 }
 0x37e   : > { %v3049_v38 = vpop.eup %3048  ;;  %v1421_v39 = vsel %vm746_vm3, %v3047_v37, 0.0  ;;  %v1678_v48 = vpop.permute.xlu1 %1677 }
 0x37f   : > { %1422 = vadd.xlane.f32.xlu1 %v1421_v39  ;;  %v1418_v40 = vsel %vm746_vm3, %v3049_v38, 0.0  ;;  %v1754_v49 = vpop.permute.xlu0 %1753 }
 0x380   : > { %1419 = vadd.xlane.f32.xlu0 %v1418_v40 }
 0x381   : > { %v3051_v41 = vpop.eup %3050 }
 0x382   : > { %v3053_v42 = vpop.eup %3052  ;;  %v1427_v43 = vsel %vm746_vm3, %v3051_v41, 0.0  ;;  %v1830_v50 = vpop.permute.xlu1 %1829 }
 0x383   : > { %1428 = vadd.xlane.f32.xlu1 %v1427_v43  ;;  %v1424_v44 = vsel %vm746_vm3, %v3053_v42, 0.0 }
 0x384   : > { %1425 = vadd.xlane.f32.xlu0 %v1424_v44 }
 0x385   : > { %v3496_v45 = vpop.eup %3054 }
 0x386   : > { %v1430_v46 = vsel %vm746_vm3, %v3496_v45, 0.0 }
 0x388   : > { %1431 = vadd.xlane.f32.xlu0 %v1430_v46 }
 0x394   : > { %1981 = vrot.lane.b32.xlu1 %v3409_v21, %s3175_s0 }
 0x39e   : > { %1905 = vrot.lane.b32.xlu0 %v3403_v20, %s3175_s0 }
 0x3af   : > { %v1414_v51 = vpop.xlane.xlu0 %1413 }
 0x3b0   : > { %3056 = vrcp.f32 %v1414_v51  ;;  %v2745_v51 = vld [vmem:[%s3680_s3] ss:$0 sm:$0xff] }
 0x3b3   : > { %v1411_v52 = vpop.xlane.xlu1 %1410 }
 0x3b4   : > { %3058 = vrcp.f32 %v1411_v52 }
 0x3ba   : > { %v3057_v53 = vpop.eup %3056 }
 0x3bb   : > { %v1442_v54 = vmul.f32 %v3057_v53, %v3481_v4 }
 0x3bd   : > { %2887 = vmatmul.mubr.msk.f32.vlgmr.msra.gmra.mrb[12].mxu1 %vm746_vm3, %v1442_v54 }
 0x3be   : > { %v3059_v55 = vpop.eup %3058  ;;  %2895 = vmatpush3.msra.mxu1 %v1678_v48  ;;  %2896 = vmatprep.mubr.msk.f32.mxu1 %vm3172_vm2, %v3169_v12 }
 0x3bf   : > { %v1441_v20 = vmul.f32 %v3059_v55, %v3485_v6  ;;  %2904 = vmatprep.subr.mxu1 %v3169_v12 }
 0x3c1   : > { %2882 = vmatmul.mubr.msk.f32.vlgmr.msra.gmra.mrb[6].mxu0 %vm746_vm3, %v1441_v20 }
 0x3c2   : > { %2890 = vmatpush3.msra.mxu0 %v1602_v47  ;;  %2891 = vmatprep.mubr.msk.f32.mxu0 %vm3172_vm2, %v3169_v12 }
 0x3c3   : > { %2899 = vmatprep.subr.mxu0 %v3169_v12 }
 0x408   : > { %v1417_v21 = vpop.xlane.xlu1 %1416 }
 0x409   : > { %3060 = vrcp.f32 %v1417_v21 }
 0x40c   : > { %v1423_v56 = vpop.xlane.xlu1 %1422 }
 0x40d   : > { %3062 = vrcp.f32 %v1423_v56  ;;  %v1420_v57 = vpop.xlane.xlu0 %1419 }
 0x40e   : > { %3064 = vrcp.f32 %v1420_v57 }
 0x410   : > { %v1429_v58 = vpop.xlane.xlu1 %1428 }
 0x411   : > { %3066 = vrcp.f32 %v1429_v58  ;;  %v1426_v59 = vpop.xlane.xlu0 %1425 }
 0x412   : > { %3068 = vrcp.f32 %v1426_v59 }
 0x413   : > { %v3061_v60 = vpop.eup %3060 }
 0x414   : > { %v1443_v61 = vmul.f32 %v3061_v60, %v3045_v33  ;;  %v1982_v10 = vpop.permute.xlu1 %1981 }
 0x415   : > { %v1432_v62 = vpop.xlane.xlu0 %1431 }
 0x416   : > { %3070 = vrcp.f32 %v1432_v62  ;;  %2892 = vmatmul.mubr.msk.f32.vlgmr.msra.gmra.mrb[8].mxu0 %vm746_vm3, %v1443_v61 }
 0x417   : > { %v3063_v63 = vpop.eup %3062  ;;  %2900 = vmatpush3.msra.mxu0 %v1754_v49  ;;  %2901 = vmatprep.mubr.msk.f32.mxu0 %vm3172_vm2, %v3169_v12 }
 0x418   : > { %v3065_v0 = vpop.eup %3064  ;;  %v1445_v1 = vmul.f32 %v3063_v63, %v3047_v37  ;;  %2909 = vmatprep.subr.mxu0 %v3169_v12 }
 0x419   : > { %v1444_v2 = vmul.f32 %v3065_v0, %v3049_v38  ;;  %v1906_v3 = vpop.permute.xlu0 %1905 }
 0x41a   : > { %2902 = vmatmul.mubr.msk.f32.vlgmr.msra.gmra.mrb[10].mxu0 %vm746_vm3, %v1445_v1 }
 0x41b   : > { %v3067_v4 = vpop.eup %3066  ;;  %2897 = vmatmul.mubr.msk.f32.vlgmr.msra.gmra.mrb[14].mxu1 %vm746_vm3, %v1444_v2  ;;  %2910 = vmatpush3.msra.mxu0 %v1906_v3 }
 0x41c   : > { %v3069_v5 = vpop.eup %3068  ;;  %v1447_v6 = vmul.f32 %v3067_v4, %v3051_v41  ;;  %2905 = vmatpush3.msra.mxu1 %v1830_v50  ;;  %2906 = vmatprep.mubr.msk.f32.mxu1 %vm3172_vm2, %v3169_v12 }
 0x41d   : > { %v1446_v8 = vmul.f32 %v3069_v5, %v3053_v42  ;;  %2911 = vmatprep.mubr.msk.f32.mxu0 %vm3172_vm2, %v3169_v12  ;;  %2914 = vmatprep.subr.mxu1 %v3169_v12 }
 0x41e   : > { %2912 = vmatmul.mubr.msk.f32.vlgmr.msra.gmra.mrb[12].mxu0 %vm746_vm3, %v1447_v6  ;;  %2969 = vmatprep.subr.bf16.mxu0 %v2968_v24 }
 0x41f   : > { %2907 = vmatmul.mubr.msk.f32.vlgmr.msra.gmra.mrb[16].mxu1 %vm746_vm3, %v1446_v8  ;;  %2971 = vmatpush3.bf16.msra.mxu0 %v2968_v24  ;;  %v2249_v24 = vld [vmem:[%s3330_s17 + $0x8] sm:$0xff] }
 0x420   : > { %v3071_v11 = vpop.eup %3070  ;;  %2915 = vmatpush3.msra.mxu1 %v1982_v10  ;;  %2916 = vmatprep.mubr.msk.f32.mxu1 %vm3172_vm2, %v3169_v12  ;;  %v2976_v25 = vpack.c.bf16 %v2249_v24, %v2248_v23 }
 0x421   : > { %v1448_v13 = vmul.f32 %v3071_v11, %v3496_v45  ;;  %2973 = vmatprep.subr.bf16.mxu0 %v2972_v27 }
 0x422   : > { %2977 = vmatprep.subr.bf16.mxu1 %v2976_v25 }
 0x423   : > { %2917 = vmatmul.mubr.msk.f32.vlgmr.msra.gmra.mrb[18].mxu1 %vm746_vm3, %v1448_v13  ;;  %2975 = vmatpush3.bf16.msra.mxu0 %v2972_v27  ;;  %v2719_v27 = vmul.f32 -1.442695, %v3371_v14 }
 0x424   : > { %2979 = vmatpush3.bf16.msra.mxu1 %v2976_v25 }
 0x490   : > { %v1597_v16 = vpop.f32.mrb[12].mxu1 }
 0x491   : > { %v2888_v17 = vpop.f32.mrb[13].mxu1 }
 0x492   : > { %v2748_v17 = vld [vmem:[%s3681_s18] ss:$0 sm:$0xff] }
 0x494   : > { %v1521_v18 = vpop.f32.mrb[6].mxu0 }
 0x495   : > { %v2883_v19 = vpop.f32.mrb[7].mxu0 }
 0x4e9   : > { %v1673_v28 = vpop.f32.mrb[8].mxu0 }
 0x4ea   : > { %v2893_v12 = vpop.f32.mrb[9].mxu0  ;;  %2059 = vrot.lane.b32.xlu0 %v1673_v28, %s3176_s27  ;;  %v2720_v28 = vmul.f32 -1.442695, %v3379_v15  ;;  %v2358_v15 = vld [vmem:[%s3340_s24] sm:$0xff] }
 0x4ed   : > { %v1825_v29 = vpop.f32.mrb[10].mxu0 }
 0x4ee   : > { %v1749_v30 = vpop.f32.mrb[14].mxu1  ;;  %2067 = vrot.lane.b32.xlu0 %v1825_v29, %s3177_s29  ;;  %v2903_v31 = vpop.f32.mrb[11].mxu0 }
 0x4ef   : > { %2061 = vrot.lane.b32.xlu1 %v1749_v30, %s3176_s27  ;;  %v2898_v32 = vpop.f32.mrb[15].mxu1 }
 0x4f0   : > { %v2250_v32 = vld [vmem:[%s3330_s17 + $0x10] sm:$0xff] }
 0x4f1   : > { %v1977_v33 = vpop.f32.mrb[12].mxu0 }
 0x4f2   : > { %v1901_v34 = vpop.f32.mrb[16].mxu1  ;;  %2075 = vrot.lane.b32.xlu0 %v1977_v33, %s3178_s28  ;;  %v2913_v35 = vpop.f32.mrb[13].mxu0 }
 0x4f3   : > { %2069 = vrot.lane.b32.xlu1 %v1901_v34, %s3177_s29  ;;  %v2908_v36 = vpop.f32.mrb[17].mxu1  ;;  %s3682_s29 = scalar_lea.vmem %s3653_s6, %s3300_s14  ;;  %v2359_v35 = vld [vmem:[%s3340_s24 + $0x8] sm:$0xff] }
 0x4f4   : > { %v2360_v36 = vld [vmem:[%s3340_s24 + $0x10] sm:$0xff] }
 0x4f6   : > { %v2053_v37 = vpop.f32.mrb[18].mxu1 }
 0x4f7   : > { %2077 = vrot.lane.b32.xlu1 %v2053_v37, %s3178_s28  ;;  %v2918_v38 = vpop.f32.mrb[19].mxu1  ;;  %v2984_v37 = vpack.c.bf16 %v2359_v35, %v2358_v15 }
 0x4f8   : > { %v2361_v38 = vld [vmem:[%s3340_s24 + $0x18] sm:$0xff] }
 0x4f9   : > { %2985 = vmatprep.subr.bf16.mxu0 %v2984_v37 }
 0x55c   : > { %v2060_v39 = vpop.permute.xlu0 %2059 }
 0x55d   : > { %v2081_v42 = vsel %vm746_vm3, %v1521_v18, %v2060_v39  ;;  %v2749_v18 = vld [vmem:[%s3682_s29] ss:$0 sm:$0xff] }
 0x560   : > { %v2068_v40 = vpop.permute.xlu0 %2067 }
 0x561   : > { %v2062_v41 = vpop.permute.xlu1 %2061  ;;  %v2084_v43 = vsel %vm2083_vm4, %v2081_v42, %v2068_v40  ;;  %v2988_v40 = vpack.c.bf16 %v2361_v38, %v2360_v36  ;;  %v2363_v42 = vld [vmem:[%s3340_s24 + $0x28] sm:$0xff] }
 0x562   : > { %v2082_v47 = vsel %vm746_vm3, %v1597_v16, %v2062_v41  ;;  %v2362_v41 = vld [vmem:[%s3340_s24 + $0x20] sm:$0xff] }
 0x564   : > { %v2076_v44 = vpop.permute.xlu0 %2075 }
 0x565   : > { %v2070_v45 = vpop.permute.xlu1 %2069  ;;  %v2087_v46 = vsel %vm2086_vm5, %v2084_v43, %v2076_v44 }
 0x566   : > { %2927 = vmatprep.mubr.msk.f32.mxu0 %vm636_vm1, %v2087_v46  ;;  %v2085_v48 = vsel %vm2083_vm4, %v2082_v47, %v2070_v45 }
 0x569   : > { %v2078_v49 = vpop.permute.xlu1 %2077 }
 0x56a   : > { %v2088_v50 = vsel %vm2086_vm5, %v2085_v48, %v2078_v49  ;;  %v2992_v48 = vpack.c.bf16 %v2363_v42, %v2362_v41 }
 0x56b   : > { %2928 = vmatmul.mubr.msk.f32.vlgmr.msra.gmra.mrb[14].mxu0 %vm636_vm1, %v2088_v50 }
 0x56c   : > { %2987 = vmatpush3.bf16.msra.mxu0 %v2984_v37 }
 0x56d   : > { %2989 = vmatprep.subr.bf16.mxu0 %v2988_v40 }
 0x570   : > { %2991 = vmatpush3.bf16.msra.mxu0 %v2988_v40 }
 0x571   : > { %2993 = vmatprep.subr.bf16.mxu0 %v2992_v48 }
 0x574   : > { %2995 = vmatpush3.bf16.msra.mxu0 %v2992_v48 }
 0x63e   : > { %v2929_v52 = vpop.f32.mrb[14].mxu0 }
 0x63f   : > { %v2178_v53 = vadd.f32 %v2929_v52, %v2745_v51  ;;  %v2172_v54 = vpop.f32.mrb[15].mxu0 }
 0x640   : > { %v2173_v55 = vadd.f32 %v2745_v51, %v2172_v54 }
 0x641   : > { %v2186_v20 = vsel %vm636_vm1, %v2178_v53, 0.0 }
 0x642   : > { %2187 = vadd.xlane.f32.xlu1 %v2186_v20  ;;  %v2183_v21 = vsel %vm636_vm1, %v2173_v55, 0.0 }
 0x643   : > { %2184 = vadd.xlane.f32.xlu0 %v2183_v21  ;;  %v2364_v21 = vld [vmem:[%s3340_s24 + $0x30] sm:$0xff] }
 0x6cf   : > { %v2188_v56 = vpop.xlane.xlu1 %2187 }
 0x6d0   : > { %v2191_v57 = vmul.f32 0.03125, %v2188_v56  ;;  %v2185_v58 = vpop.xlane.xlu0 %2184  ;;  %v2365_v56 = vld [vmem:[%s3340_s24 + $0x38] sm:$0xff] }
 0x6d1   : > { %v2190_v59 = vmul.f32 0.03125, %v2185_v58  ;;  %v2750_v58 = vld [vmem:[%s599_s1] ss:$0 sm:$0xff] }
 0x6d2   : > { %v2193_v60 = vsub.f32 %v2178_v53, %v2191_v57  ;;  %v2996_v57 = vpack.c.bf16 %v2365_v56, %v2364_v21 }
 0x6d3   : > { %v2192_v61 = vsub.f32 %v2173_v55, %v2190_v59 }
 0x6d4   : > { %v2195_v0 = vmul.f32 %v2193_v60, %v2193_v60  ;;  %2997 = vmatprep.subr.bf16.mxu0 %v2996_v57 }
 0x6d5   : > { %v2194_v62 = vmul.f32 %v2192_v61, %v2192_v61  ;;  %2999 = vmatpush3.bf16.msra.mxu0 %v2996_v57 }
 0x6d6   : > { %v2199_v1 = vsel %vm636_vm1, %v2195_v0, 0.0 }
 0x6d7   : > { %v2196_v63 = vsel %vm636_vm1, %v2194_v62, 0.0 }
 0x6d8   : > { %2197 = vadd.xlane.f32.xlu0 %v2196_v63 }
 0x6dc   : > { %2200 = vadd.xlane.f32.xlu0 %v2199_v1  ;;  %v2755_v1 = vld [vmem:[%s607_s13] ss:$0 sm:$0xff] }
 0x6f2   : > { %2238 = vrot.lane.b32.xlu0 %v3356_v7, %s3174_s23 }
 0x765   : > { %v2198_v2 = vpop.xlane.xlu0 %2197 }
 0x766   : > { %v2202_v3 = vmul.f32 0.03125, %v2198_v2 }
 0x768   : > { %v2204_v4 = vadd.f32 1e-05, %v2202_v3 }
 0x769   : > { %v2201_v5 = vpop.xlane.xlu0 %2200 }
 0x76a   : > { %v2203_v6 = vmul.f32 0.03125, %v2201_v5  ;;  %3072 = vrsqrt.f32 %v2204_v4 }
 0x76c   : > { %v2205_v8 = vadd.f32 1e-05, %v2203_v6 }
 0x76d   : > { %v2239_v39 = vpop.permute.xlu0 %2238 }
 0x76e   : > { %3074 = vrsqrt.f32 %v2205_v8 }
 0x76f   : > { %3076 = vpow2.f32 %v2719_v27 }
 0x770   : > { %3078 = vpow2.f32 %v2720_v28 }
 0x774   : > { %v3073_v10 = vpop.eup %3072 }
 0x775   : > { %v2208_v16 = vmul.f32 %v3073_v10, %v2192_v61 }
 0x777   : > { %v2216_v22 = vmul.f32 %v2748_v17, %v2208_v16 }
 0x778   : > { %v3075_v11 = vpop.eup %3074 }
 0x779   : > { %v2209_v13 = vmul.f32 %v3075_v11, %v2193_v60  ;;  %v2224_v26 = vadd.f32 %v2749_v18, %v2216_v22  ;;  %v3077_v12 = vpop.eup %3076 }
 0x77a   : > { %v724_v29 = vadd.f32 1.0, %v3077_v12  ;;  %v3079_v30 = vpop.eup %3078 }
 0x77b   : > { %v2217_v7 = vmul.f32 %v2748_v17, %v2209_v13  ;;  %v725_v31 = vadd.f32 1.0, %v3079_v30  ;;  %v2758_v30 = vld [vmem:[%s610_s15] ss:$0 sm:$0xff] }
 0x77c   : > { %3080 = vrcp.f32 %v724_v29 }
 0x77d   : > { %v2225_v19 = vadd.f32 %v2749_v18, %v2217_v7  ;;  %3082 = vrcp.f32 %v725_v31 }
 0x77f   : > { %2230 = vrot.lane.b32.xlu1 %v2225_v19, %s3174_s23 }
 0x783   : > { %2228 = vrot.lane.b32.xlu1 %v2224_v26, %s3174_s23 }
 0x786   : > { %v3081_v14 = vpop.eup %3080 }
 0x787   : > { %2240 = vrot.lane.b32.xlu1 %v3360_v9, %s3174_s23  ;;  %v2251_v9 = vld [vmem:[%s3330_s17 + $0x18] sm:$0xff]  ;;  %v2236_v43 = vsub.f32 1.0, %v3081_v14  ;;  %v3083_v44 = vpop.eup %3082  ;;  %s3179_s17 = smov 32  }
 0x788   : > { %v2980_v33 = vpack.c.bf16 %v2251_v9, %v2250_v32  ;;  %v2237_v50 = vsub.f32 1.0, %v3083_v44  ;;  %v2759_v32 = vld [vmem:[%s613_s25] ss:$0 sm:$0xff]  ;;  %s3180_s25 = smov [#allocation6]  }
 0x789   : > { %v2244_v46 = vmul.f32 %v2239_v39, %v2236_v43  ;;  %s2539_s14 = sshll.u32 %s3180_s25, 4  ;;  %s2540_s14 = int_to_ptr.vmem [resolvable:$true] %s2539_s14 }
 0x78a   : > { %2981 = vmatprep.subr.bf16.mxu1 %v2980_v33  ;;  %s3124_s15 = scalar_lea.vmem %s2540_s14, 256  ;;  %p3131_p12 = scmp.lt.s32.totalorder %s2540_s14, %s2540_s14 }
 0x78b   : > { %2983 = vmatpush3.bf16.msra.mxu1 %v2980_v33  ;;  %p3125_p6 = scmp.ne.s32.totalorder %s2540_s14, %s3124_s15  ;;  %p3132_p13 = scmp.lt.s32.totalorder %s3124_s15, %s3124_s15 }
 0x78d   : > { %p3126_p10 = pnand %p3125_p6, %p3014_p4  ;;  %p3133_p0 = por %p3132_p13, %p3131_p12 }
 0x78f   : > { %p3127_p11 = pneg %p3126_p10 }
 0x791   : > { %p3134_p1 = pnand %p3133_p0, %p3127_p11 }
 0x7f1   : > { %v2231_v34 = vpop.permute.xlu1 %2230 }
 0x7f2   : > { %v2235_v52 = vmul.f32 %v3083_v44, %v2231_v34 }
 0x7f5   : > { %v2229_v45 = vpop.permute.xlu1 %2228 }
 0x7f6   : > { %v2234_v47 = vmul.f32 %v3081_v14, %v2229_v45 }
 0x7f8   : > { %v2246_v49 = vadd.f32 %v2244_v46, %v2234_v47 }
 0x7f9   : > { %v2241_v51 = vpop.permute.xlu1 %2240 }
 0x7fa   : > { %v2245_v53 = vmul.f32 %v2241_v51, %v2237_v50  ;;  %2261 = vrot.lane.b32.xlu0 %v2246_v49, %s3179_s17 }
 0x7fc   : > { %v3578_v54 = vadd.f32 %v2245_v53, %v2235_v52 }
 0x7fe   : > { %2263 = vrot.lane.b32.xlu1 %v3578_v54, %s3179_s17 }
 0x86c   : > { %v2262_v55 = vpop.permute.xlu0 %2261 }
 0x86d   : > { %2938 = vmatprep.mubr.msk.f32.mxu1 %vm636_vm1, %v2262_v55 }
 0x870   : > { %v2264_v20 = vpop.permute.xlu1 %2263 }
 0x871   : > { %2939 = vmatmul.mubr.msk.f32.vlgmr.msra.gmra.mrb[20].mxu1 %vm636_vm1, %v2264_v20 }
 0x944   : > { %v2940_v59 = vpop.f32.mrb[20].mxu1 }
 0x945   : > { %v2341_v60 = vadd.f32 %v2940_v59, %v2750_v58  ;;  %v2335_v61 = vpop.f32.mrb[21].mxu1 }
 0x946   : > { %v2336_v62 = vadd.f32 %v2750_v58, %v2335_v61 }
 0x947   : > { %v2345_v0 = vmax.f32 %v2341_v60, 0.0  ;;  %v2754_v37 = vmul.f32 -1.442695, %v2341_v60 }
 0x948   : > { %v2344_v63 = vmax.f32 %v2336_v62, 0.0  ;;  %v2753_v36 = vmul.f32 -1.442695, %v2336_v62 }
 0x94a   : > { %2957 = vmatprep.mubr.msk.f32.mxu0 %vm2373_vm6, %v2344_v63 }
 0x94b   : > { %2958 = vmatmul.mubr.msk.f32.vlgmr.msra.gmra.mrb[16].mxu0 %vm2373_vm6, %v2345_v0 }
 0xa1e   : > { %v2959_v2 = vpop.f32.mrb[16].mxu0 }
 0xa1f   : > { %v2452_v3 = vadd.f32 %v2959_v2, %v2755_v1  ;;  %v2446_v4 = vpop.f32.mrb[17].mxu0 }
 0xa20   : > { %v2447_v5 = vadd.f32 %v2755_v1, %v2446_v4 }
 0xa21   : > { %v2460_v6 = vsel %vm636_vm1, %v2452_v3, 0.0 }
 0xa22   : > { %2461 = vadd.xlane.f32.xlu1 %v2460_v6  ;;  %v2457_v8 = vsel %vm636_vm1, %v2447_v5, 0.0 }
 0xa23   : > { %2458 = vadd.xlane.f32.xlu0 %v2457_v8 }
 0xa33   : > { %2511 = vrot.lane.b32.xlu1 %v2246_v49, %s3174_s23 }
 0xaaf   : > { %v2462_v10 = vpop.xlane.xlu1 %2461 }
 0xab0   : > { %v2464_v11 = vmul.f32 0.03125, %v2462_v10  ;;  %v2459_v13 = vpop.xlane.xlu0 %2458 }
 0xab1   : > { %v2463_v16 = vmul.f32 0.03125, %v2459_v13 }
 0xab2   : > { %v2466_v17 = vsub.f32 %v2452_v3, %v2464_v11 }
 0xab3   : > { %v2465_v7 = vsub.f32 %v2447_v5, %v2463_v16  ;;  %v2512_v43 = vpop.permute.xlu1 %2511 }
 0xab4   : > { %v2468_v22 = vmul.f32 %v2466_v17, %v2466_v17 }
 0xab5   : > { %v2467_v18 = vmul.f32 %v2465_v7, %v2465_v7 }
 0xab6   : > { %v2472_v23 = vsel %vm636_vm1, %v2468_v22, 0.0 }
 0xab7   : > { %v2469_v19 = vsel %vm636_vm1, %v2467_v18, 0.0 }
 0xab8   : > { %2470 = vadd.xlane.f32.xlu0 %v2469_v19 }
 0xabc   : > { %2473 = vadd.xlane.f32.xlu0 %v2472_v23 }
 0xb45   : > { %v2471_v24 = vpop.xlane.xlu0 %2470 }
 0xb46   : > { %v2475_v25 = vmul.f32 0.03125, %v2471_v24 }
 0xb48   : > { %v2477_v26 = vadd.f32 1e-05, %v2475_v25 }
 0xb49   : > { %v2474_v27 = vpop.xlane.xlu0 %2473 }
 0xb4a   : > { %3084 = vrsqrt.f32 %v2477_v26  ;;  %v2476_v28 = vmul.f32 0.03125, %v2474_v27 }
 0xb4c   : > { %v2478_v12 = vadd.f32 1e-05, %v2476_v28 }
 0xb4e   : > { %3086 = vrsqrt.f32 %v2478_v12 }
 0xb4f   : > { %3088 = vpow2.f32 %v2753_v36 }
 0xb50   : > { %3090 = vpow2.f32 %v2754_v37 }
 0xb54   : > { %v3085_v29 = vpop.eup %3084 }
 0xb55   : > { %v2481_v31 = vmul.f32 %v3085_v29, %v2465_v7 }
 0xb57   : > { %v2489_v9 = vmul.f32 %v2758_v30, %v2481_v31 }
 0xb58   : > { %v3087_v33 = vpop.eup %3086 }
 0xb59   : > { %v2497_v14 = vadd.f32 %v2759_v32, %v2489_v9  ;;  %v2482_v34 = vmul.f32 %v3087_v33, %v2466_v17  ;;  %v3089_v38 = vpop.eup %3088 }
 0xb5a   : > { %v2352_v39 = vadd.f32 1.0, %v3089_v38  ;;  %v3091_v40 = vpop.eup %3090 }
 0xb5b   : > { %2501 = vrot.lane.b32.xlu1 %v2497_v14, %s3175_s0  ;;  %v2490_v15 = vmul.f32 %v2758_v30, %v2482_v34  ;;  %v2353_v41 = vadd.f32 1.0, %v3091_v40 }
 0xb5c   : > { %3092 = vrcp.f32 %v2352_v39 }
 0xb5d   : > { %v2498_v35 = vadd.f32 %v2759_v32, %v2490_v15  ;;  %3094 = vrcp.f32 %v2353_v41 }
 0xb5f   : > { %2513 = vrot.lane.b32.xlu1 %v3578_v54, %s3174_s23  ;;  %2503 = vrot.lane.b32.xlu0 %v2498_v35, %s3175_s0 }
 0xb66   : > { %v3093_v42 = vpop.eup %3092 }
 0xb67   : > { %v2509_v44 = vsub.f32 1.0, %v3093_v42  ;;  %v3095_v45 = vpop.eup %3094 }
 0xb68   : > { %v2510_v50 = vsub.f32 1.0, %v3095_v45 }
 0xb69   : > { %v2517_v47 = vmul.f32 %v2512_v43, %v2509_v44 }
 0xbcd   : > { %v2502_v46 = vpop.permute.xlu1 %2501 }
 0xbce   : > { %v2507_v48 = vmul.f32 %v3093_v42, %v2502_v46 }
 0xbd0   : > { %v2519_v49 = vadd.f32 %v2517_v47, %v2507_v48 }
 0xbd1   : > { %v2514_v51 = vpop.permute.xlu1 %2513  ;;  %v2504_v52 = vpop.permute.xlu0 %2503 }
 0xbd2   : > { %v2518_v53 = vmul.f32 %v2514_v51, %v2510_v50  ;;  %v2508_v54 = vmul.f32 %v3095_v45, %v2504_v52  ;;  %2523 = vrot.lane.b32.xlu0 %v2519_v49, %s3175_s0 }
 0xbd4   : > { %v2520_v55 = vadd.f32 %v2518_v53, %v2508_v54 }
 0xbd6   : > { %2525 = vrot.lane.b32.xlu1 %v2520_v55, %s3175_s0 }
 0xc44   : > { %v2524_v20 = vpop.permute.xlu0 %2523 }
 0xc45   : > { %2529 = vst.msk [vmem:[#allocation2] sm:$0xff] %vm636_vm1, %v2524_v20  ;;  %2531 = vst.msk [vmem:[#allocation6] sm:$0xff] %vm636_vm1, %v2524_v20 }
 0xc48   : > { %v2526_v21 = vpop.permute.xlu1 %2525 }
 0xc49   : > { %2530 = vst.msk [vmem:[#allocation2 + $0x8] sm:$0xff] %vm636_vm1, %v2526_v21  ;;  %2532 = vst.msk [vmem:[#allocation6 + $0x8] sm:$0xff] %vm636_vm1, %v2526_v21 }
 0xc4a   : > { %3137 = shalt.err (!%p3134_p1)
}
 0xc4b   : > { %s3683_s19 = sld [smem:[#allocation13_spill]] }
 0xc51   : > { %s3138_s18 = scalar_lea.hbm %s3683_s19, 256 }
 0xc52   : > { %p3139_p5 = scmp.ne.s32.totalorder %s3683_s19, %s3138_s18  ;;  %p3144_p8 = scmp.lt.u32.totalorder %s3138_s18, %s3683_s19 }
 0xc54   : > { %p3140_p7 = pnand %p3139_p5, %p3014_p4 }
 0xc56   : > { %p3141_p9 = pneg %p3140_p7 }
 0xc58   : > { %p3146_p2 = pnand %p3144_p8, %p3141_p9 }
 0xc5a   : > { %3149 = shalt.err (!%p3146_p2)
}
 0xc5b   : > { %s3181_s28 = smov 128  }
 0xc5c   : > { %3005 = dma.vmem_to_hbm [thread:$0]  (%p3014_p4), %s2540_s14, 256, %s3683_s19, [#allocation5], %s3181_s28, %s3181_s28, %s3176_s27  }
 0xc5d   : > { %3159 = dma.done.wait (%p3014_p4), [#allocation5], 256  }
 0xc5e   : > { %3161 = vsyncadd (%p3014_p4), [#allocation5], 4294967040 }
 0xc5f PF: > { %s3684_s3 = sld [smem:[#allocation9_spill]] }
 0xc65   : > { %s25_s25 = sadd.s32 1, %s3684_s3  }
 0xc66   : > { %p22_p3 = scmp.ge.s32.totalorder %s25_s25, 4  }
 0xc68   :  { %24 = sbr.rel (!%p22_p3) target bundleno = 7 (0x7), region = 141 }
 0xc6f   :  { %2555 = vsyncpa [#allocation4], 1 }
 0xc70   :  { %2557 = vsyncpa [#allocation4 + $0x1], 1 }
 0xc71   :  { %2558 = vsyncpa [#allocation5], 1 }
 0xc72   :  { %2560 = vsyncpa [#allocation5 + $0x1], 1 }

</bundles_post_ra>
